<compile_context>
chip_gen: v5e
topology: v5e:2x2
jax: 0.10.0
libtpu: 0.0.40
codegen_flags: <defaults>
</compile_context>

<pallas_src>
import jax
import jax.numpy as jnp
from jax.experimental import pallas as pl
from jax.experimental.pallas import tpu as pltpu

H, W = 14, 14
HW = H * W                         # 196: flat spatial, lives in lanes
CIN, COUT = 192, 48
KH, KW = 3, 3
KK = KH * KW
PAD = (KH // 2) * W + (KW // 2)    # 15: zero guard lanes on each side
XW = HW + 2 * PAD                  # 226: guarded flat spatial width


def relu_conv_kernel(x_ref, w_ref, o_ref, xr_ref):
    # x_ref : (CIN, HW)        flat NCHW input slab
    # w_ref : (KK*COUT, CIN)   tap-stacked weights, rows ordered (kh, kw, cout)
    # o_ref : (COUT, HW)       flat NCHW output slab (lane-dense stores)
    # xr_ref: (CIN, XW)        VMEM scratch: zero-guarded ReLU'd input

    # Build the zero-padded, ReLU'd slab once in VMEM (replaces wrapper jnp.pad).
    xr_ref[...] = jnp.zeros((CIN, XW), jnp.float32)
    xr_ref[:, PAD:PAD + HW] = jnp.maximum(x_ref[...], 0.0)

    # Column-validity masks for the horizontal taps, built from an in-kernel
    # iota (no runtime operand, no closed-over constants, no integer mod).
    q = jax.lax.broadcasted_iota(jnp.int32, (1, HW), 1)
    not_left = jnp.ones((1, HW), jnp.float32)      # 0 where output column w == 0
    not_right = jnp.ones((1, HW), jnp.float32)     # 0 where output column w == W-1
    for h in range(H):
        not_left = jnp.where(q == h * W, 0.0, not_left)
        not_right = jnp.where(q == h * W + (W - 1), 0.0, not_right)

    acc = jnp.zeros((COUT, HW), jnp.float32)
    for kh in range(KH):
        # One tall MXU matmul per kernel row: (3*COUT, CIN) @ (CIN, XW).
        t = jnp.dot(w_ref[kh * KW * COUT:(kh + 1) * KW * COUT, :], xr_ref[...],
                    preferred_element_type=jnp.float32)          # (3*COUT, XW)
        for kw in range(KW):
            off = PAD + (kh - 1) * W + (kw - 1)                  # lane shift of this tap
            s = t[kw * COUT:(kw + 1) * COUT, off:off + HW]       # (COUT, HW) static slice
            if kw == 0:
                s = s * not_left           # drop out-of-image left-column reads
            elif kw == KW - 1:
                s = s * not_right          # drop out-of-image right-column reads
            # kw == 1 (vertical) overflow lands in the zero guard lanes: no mask.
            acc = acc + s
    o_ref[...] = acc


def prepare_weights(w_oihw):
    """(COUT, CIN, KH, KW) -> (KH*KW*COUT, CIN), rows ordered (kh, kw, cout).

    Done once, outside the per-call path (weights are static)."""
    return jnp.transpose(w_oihw, (2, 3, 0, 1)).reshape(KK * COUT, CIN)


@jax.jit
def relu_conv2d(x_nchw, w_flat):
    """x: (1, CIN, H, W) f32, w_flat: (KK*COUT, CIN) f32 -> (1, COUT, H, W) f32."""
    x2d = x_nchw.reshape(CIN, HW)                   # free: NCHW with N=1, no transpose
    out2d = pl.pallas_call(
        relu_conv_kernel,
        out_shape=jax.ShapeDtypeStruct((COUT, HW), jnp.float32),
        grid=(1,),                                  # single invocation on every TPU gen
        in_specs=[
            pl.BlockSpec((CIN, HW), lambda i: (0, 0)),
            pl.BlockSpec((KK * COUT, CIN), lambda i: (0, 0)),
        ],
        out_specs=pl.BlockSpec((COUT, HW), lambda i: (0, 0)),
        scratch_shapes=[pltpu.VMEM((CIN, XW), jnp.float32)],
    )(x2d, w_flat)
    return out2d.reshape(1, COUT, H, W)             # already channel-major


def reference(x_nchw, w_oihw):
    x = jnp.maximum(x_nchw, 0.0)
    return jax.lax.conv_general_dilated(
        x, w_oihw, window_strides=(1, 1), padding=((1, 1), (1, 1)),
        dimension_numbers=("NCHW", "OIHW", "NCHW"))


if __name__ == "__main__":
    key = jax.random.PRNGKey(0)
    kx, kw = jax.random.split(key)
    # deterministic synthetic input / weights (shapes from the module's __init__)
    x = jax.random.normal(kx, (1, CIN, H, W), dtype=jnp.float32)
    w = jax.random.normal(kw, (COUT, CIN, KH, KW), dtype=jnp.float32) * 0.05

    w_flat = jax.block_until_ready(prepare_weights(w))   # one-time weight re-layout

    out = jax.block_until_ready(relu_conv2d(x, w_flat))
    ref = jax.block_until_ready(reference(x, w))

    assert out.shape == (1, COUT, H, W), out.shape
    assert jnp.allclose(out, ref, atol=1e-4, rtol=1e-4), float(jnp.max(jnp.abs(out - ref)))

    print("KERNEL_OK")
</pallas_src>

<mosaic_0001>
module attributes {stable_mosaic.version = 11 : i64} {
  func.func @relu_conv_kernel(%arg0: i32, %arg1: memref<192x196xf32, #tpu.memory_space<vmem>>, %arg2: memref<432x192xf32, #tpu.memory_space<vmem>>, %arg3: memref<48x196xf32, #tpu.memory_space<vmem>>, %arg4: memref<192x226xf32, #tpu.memory_space<vmem>>) attributes {dimension_semantics = [#tpu.dimension_semantics<arbitrary>], iteration_bounds = array<i64: 1>, scalar_prefetch = 0 : i64, scratch_operands = 1 : i64, tpu.core_type = #tpu.core_type<tc>, window_params = [{pipeline_mode = #tpu.pipeline_mode<synchronous>, transform_indices = @transform_0, window_bounds = array<i64: 192, 196>}, {pipeline_mode = #tpu.pipeline_mode<synchronous>, transform_indices = @transform_1, window_bounds = array<i64: 432, 192>}, {pipeline_mode = #tpu.pipeline_mode<synchronous>, transform_indices = @transform_2, window_bounds = array<i64: 48, 196>}]} {
    %cst = arith.constant 0.000000e+00 : f32
    %0 = vector.broadcast %cst : f32 to vector<192x226xf32>
    %c0 = arith.constant 0 : index
    %c0_0 = arith.constant 0 : index
    %1 = vector.load %arg4[%c0, %c0_0] : memref<192x226xf32, #tpu.memory_space<vmem>>, vector<192x226xf32>
    tpu.vector_store %arg4[%c0, %c0_0], %0 {strides = array<i32>} : memref<192x226xf32, #tpu.memory_space<vmem>>, vector<192x226xf32>,
    %c0_1 = arith.constant 0 : index
    %c0_2 = arith.constant 0 : index
    %2 = vector.load %arg1[%c0_1, %c0_2] : memref<192x196xf32, #tpu.memory_space<vmem>>, vector<192x196xf32>
    %cst_3 = arith.constant 0.000000e+00 : f32
    %3 = vector.broadcast %cst_3 : f32 to vector<192x196xf32>
    %4 = arith.maximumf %2, %3 : vector<192x196xf32>
    %c0_4 = arith.constant 0 : index
    %c15 = arith.constant 15 : index
    %5 = vector.load %arg4[%c0_4, %c15] : memref<192x226xf32, #tpu.memory_space<vmem>>, vector<192x196xf32>
    tpu.vector_store %arg4[%c0_4, %c15], %4 {strides = array<i32>} : memref<192x226xf32, #tpu.memory_space<vmem>>, vector<192x196xf32>,
    %6 = tpu.iota {dimensions = array<i32: 1>} : vector<1x196xi32>
    %cst_5 = arith.constant 1.000000e+00 : f32
    %7 = vector.broadcast %cst_5 : f32 to vector<1x196xf32>
    %cst_6 = arith.constant 1.000000e+00 : f32
    %8 = vector.broadcast %cst_6 : f32 to vector<1x196xf32>
    %c0_i32 = arith.constant 0 : i32
    %9 = vector.broadcast %c0_i32 : i32 to vector<1x196xi32>
    %10 = arith.cmpi eq, %6, %9 : vector<1x196xi32>
    %cst_7 = arith.constant 0.000000e+00 : f32
    %11 = vector.broadcast %cst_7 : f32 to vector<1x196xf32>
    %12 = arith.select %10, %11, %7 : vector<1x196xi1>, vector<1x196xf32>
    %c13_i32 = arith.constant 13 : i32
    %13 = vector.broadcast %c13_i32 : i32 to vector<1x196xi32>
    %14 = arith.cmpi eq, %6, %13 : vector<1x196xi32>
    %cst_8 = arith.constant 0.000000e+00 : f32
    %15 = vector.broadcast %cst_8 : f32 to vector<1x196xf32>
    %16 = arith.select %14, %15, %8 : vector<1x196xi1>, vector<1x196xf32>
    %c14_i32 = arith.constant 14 : i32
    %17 = vector.broadcast %c14_i32 : i32 to vector<1x196xi32>
    %18 = arith.cmpi eq, %6, %17 : vector<1x196xi32>
    %cst_9 = arith.constant 0.000000e+00 : f32
    %19 = vector.broadcast %cst_9 : f32 to vector<1x196xf32>
    %20 = arith.select %18, %19, %12 : vector<1x196xi1>, vector<1x196xf32>
    %c27_i32 = arith.constant 27 : i32
    %21 = vector.broadcast %c27_i32 : i32 to vector<1x196xi32>
    %22 = arith.cmpi eq, %6, %21 : vector<1x196xi32>
    %cst_10 = arith.constant 0.000000e+00 : f32
    %23 = vector.broadcast %cst_10 : f32 to vector<1x196xf32>
    %24 = arith.select %22, %23, %16 : vector<1x196xi1>, vector<1x196xf32>
    %c28_i32 = arith.constant 28 : i32
    %25 = vector.broadcast %c28_i32 : i32 to vector<1x196xi32>
    %26 = arith.cmpi eq, %6, %25 : vector<1x196xi32>
    %cst_11 = arith.constant 0.000000e+00 : f32
    %27 = vector.broadcast %cst_11 : f32 to vector<1x196xf32>
    %28 = arith.select %26, %27, %20 : vector<1x196xi1>, vector<1x196xf32>
    %c41_i32 = arith.constant 41 : i32
    %29 = vector.broadcast %c41_i32 : i32 to vector<1x196xi32>
    %30 = arith.cmpi eq, %6, %29 : vector<1x196xi32>
    %cst_12 = arith.constant 0.000000e+00 : f32
    %31 = vector.broadcast %cst_12 : f32 to vector<1x196xf32>
    %32 = arith.select %30, %31, %24 : vector<1x196xi1>, vector<1x196xf32>
    %c42_i32 = arith.constant 42 : i32
    %33 = vector.broadcast %c42_i32 : i32 to vector<1x196xi32>
    %34 = arith.cmpi eq, %6, %33 : vector<1x196xi32>
    %cst_13 = arith.constant 0.000000e+00 : f32
    %35 = vector.broadcast %cst_13 : f32 to vector<1x196xf32>
    %36 = arith.select %34, %35, %28 : vector<1x196xi1>, vector<1x196xf32>
    %c55_i32 = arith.constant 55 : i32
    %37 = vector.broadcast %c55_i32 : i32 to vector<1x196xi32>
    %38 = arith.cmpi eq, %6, %37 : vector<1x196xi32>
    %cst_14 = arith.constant 0.000000e+00 : f32
    %39 = vector.broadcast %cst_14 : f32 to vector<1x196xf32>
    %40 = arith.select %38, %39, %32 : vector<1x196xi1>, vector<1x196xf32>
    %c56_i32 = arith.constant 56 : i32
    %41 = vector.broadcast %c56_i32 : i32 to vector<1x196xi32>
    %42 = arith.cmpi eq, %6, %41 : vector<1x196xi32>
    %cst_15 = arith.constant 0.000000e+00 : f32
    %43 = vector.broadcast %cst_15 : f32 to vector<1x196xf32>
    %44 = arith.select %42, %43, %36 : vector<1x196xi1>, vector<1x196xf32>
    %c69_i32 = arith.constant 69 : i32
    %45 = vector.broadcast %c69_i32 : i32 to vector<1x196xi32>
    %46 = arith.cmpi eq, %6, %45 : vector<1x196xi32>
    %cst_16 = arith.constant 0.000000e+00 : f32
    %47 = vector.broadcast %cst_16 : f32 to vector<1x196xf32>
    %48 = arith.select %46, %47, %40 : vector<1x196xi1>, vector<1x196xf32>
    %c70_i32 = arith.constant 70 : i32
    %49 = vector.broadcast %c70_i32 : i32 to vector<1x196xi32>
    %50 = arith.cmpi eq, %6, %49 : vector<1x196xi32>
    %cst_17 = arith.constant 0.000000e+00 : f32
    %51 = vector.broadcast %cst_17 : f32 to vector<1x196xf32>
    %52 = arith.select %50, %51, %44 : vector<1x196xi1>, vector<1x196xf32>
    %c83_i32 = arith.constant 83 : i32
    %53 = vector.broadcast %c83_i32 : i32 to vector<1x196xi32>
    %54 = arith.cmpi eq, %6, %53 : vector<1x196xi32>
    %cst_18 = arith.constant 0.000000e+00 : f32
    %55 = vector.broadcast %cst_18 : f32 to vector<1x196xf32>
    %56 = arith.select %54, %55, %48 : vector<1x196xi1>, vector<1x196xf32>
    %c84_i32 = arith.constant 84 : i32
    %57 = vector.broadcast %c84_i32 : i32 to vector<1x196xi32>
    %58 = arith.cmpi eq, %6, %57 : vector<1x196xi32>
    %cst_19 = arith.constant 0.000000e+00 : f32
    %59 = vector.broadcast %cst_19 : f32 to vector<1x196xf32>
    %60 = arith.select %58, %59, %52 : vector<1x196xi1>, vector<1x196xf32>
    %c97_i32 = arith.constant 97 : i32
    %61 = vector.broadcast %c97_i32 : i32 to vector<1x196xi32>
    %62 = arith.cmpi eq, %6, %61 : vector<1x196xi32>
    %cst_20 = arith.constant 0.000000e+00 : f32
    %63 = vector.broadcast %cst_20 : f32 to vector<1x196xf32>
    %64 = arith.select %62, %63, %56 : vector<1x196xi1>, vector<1x196xf32>
    %c98_i32 = arith.constant 98 : i32
    %65 = vector.broadcast %c98_i32 : i32 to vector<1x196xi32>
    %66 = arith.cmpi eq, %6, %65 : vector<1x196xi32>
    %cst_21 = arith.constant 0.000000e+00 : f32
    %67 = vector.broadcast %cst_21 : f32 to vector<1x196xf32>
    %68 = arith.select %66, %67, %60 : vector<1x196xi1>, vector<1x196xf32>
    %c111_i32 = arith.constant 111 : i32
    %69 = vector.broadcast %c111_i32 : i32 to vector<1x196xi32>
    %70 = arith.cmpi eq, %6, %69 : vector<1x196xi32>
    %cst_22 = arith.constant 0.000000e+00 : f32
    %71 = vector.broadcast %cst_22 : f32 to vector<1x196xf32>
    %72 = arith.select %70, %71, %64 : vector<1x196xi1>, vector<1x196xf32>
    %c112_i32 = arith.constant 112 : i32
    %73 = vector.broadcast %c112_i32 : i32 to vector<1x196xi32>
    %74 = arith.cmpi eq, %6, %73 : vector<1x196xi32>
    %cst_23 = arith.constant 0.000000e+00 : f32
    %75 = vector.broadcast %cst_23 : f32 to vector<1x196xf32>
    %76 = arith.select %74, %75, %68 : vector<1x196xi1>, vector<1x196xf32>
    %c125_i32 = arith.constant 125 : i32
    %77 = vector.broadcast %c125_i32 : i32 to vector<1x196xi32>
    %78 = arith.cmpi eq, %6, %77 : vector<1x196xi32>
    %cst_24 = arith.constant 0.000000e+00 : f32
    %79 = vector.broadcast %cst_24 : f32 to vector<1x196xf32>
    %80 = arith.select %78, %79, %72 : vector<1x196xi1>, vector<1x196xf32>
    %c126_i32 = arith.constant 126 : i32
    %81 = vector.broadcast %c126_i32 : i32 to vector<1x196xi32>
    %82 = arith.cmpi eq, %6, %81 : vector<1x196xi32>
    %cst_25 = arith.constant 0.000000e+00 : f32
    %83 = vector.broadcast %cst_25 : f32 to vector<1x196xf32>
    %84 = arith.select %82, %83, %76 : vector<1x196xi1>, vector<1x196xf32>
    %c139_i32 = arith.constant 139 : i32
    %85 = vector.broadcast %c139_i32 : i32 to vector<1x196xi32>
    %86 = arith.cmpi eq, %6, %85 : vector<1x196xi32>
    %cst_26 = arith.constant 0.000000e+00 : f32
    %87 = vector.broadcast %cst_26 : f32 to vector<1x196xf32>
    %88 = arith.select %86, %87, %80 : vector<1x196xi1>, vector<1x196xf32>
    %c140_i32 = arith.constant 140 : i32
    %89 = vector.broadcast %c140_i32 : i32 to vector<1x196xi32>
    %90 = arith.cmpi eq, %6, %89 : vector<1x196xi32>
    %cst_27 = arith.constant 0.000000e+00 : f32
    %91 = vector.broadcast %cst_27 : f32 to vector<1x196xf32>
    %92 = arith.select %90, %91, %84 : vector<1x196xi1>, vector<1x196xf32>
    %c153_i32 = arith.constant 153 : i32
    %93 = vector.broadcast %c153_i32 : i32 to vector<1x196xi32>
    %94 = arith.cmpi eq, %6, %93 : vector<1x196xi32>
    %cst_28 = arith.constant 0.000000e+00 : f32
    %95 = vector.broadcast %cst_28 : f32 to vector<1x196xf32>
    %96 = arith.select %94, %95, %88 : vector<1x196xi1>, vector<1x196xf32>
    %c154_i32 = arith.constant 154 : i32
    %97 = vector.broadcast %c154_i32 : i32 to vector<1x196xi32>
    %98 = arith.cmpi eq, %6, %97 : vector<1x196xi32>
    %cst_29 = arith.constant 0.000000e+00 : f32
    %99 = vector.broadcast %cst_29 : f32 to vector<1x196xf32>
    %100 = arith.select %98, %99, %92 : vector<1x196xi1>, vector<1x196xf32>
    %c167_i32 = arith.constant 167 : i32
    %101 = vector.broadcast %c167_i32 : i32 to vector<1x196xi32>
    %102 = arith.cmpi eq, %6, %101 : vector<1x196xi32>
    %cst_30 = arith.constant 0.000000e+00 : f32
    %103 = vector.broadcast %cst_30 : f32 to vector<1x196xf32>
    %104 = arith.select %102, %103, %96 : vector<1x196xi1>, vector<1x196xf32>
    %c168_i32 = arith.constant 168 : i32
    %105 = vector.broadcast %c168_i32 : i32 to vector<1x196xi32>
    %106 = arith.cmpi eq, %6, %105 : vector<1x196xi32>
    %cst_31 = arith.constant 0.000000e+00 : f32
    %107 = vector.broadcast %cst_31 : f32 to vector<1x196xf32>
    %108 = arith.select %106, %107, %100 : vector<1x196xi1>, vector<1x196xf32>
    %c181_i32 = arith.constant 181 : i32
    %109 = vector.broadcast %c181_i32 : i32 to vector<1x196xi32>
    %110 = arith.cmpi eq, %6, %109 : vector<1x196xi32>
    %cst_32 = arith.constant 0.000000e+00 : f32
    %111 = vector.broadcast %cst_32 : f32 to vector<1x196xf32>
    %112 = arith.select %110, %111, %104 : vector<1x196xi1>, vector<1x196xf32>
    %c182_i32 = arith.constant 182 : i32
    %113 = vector.broadcast %c182_i32 : i32 to vector<1x196xi32>
    %114 = arith.cmpi eq, %6, %113 : vector<1x196xi32>
    %cst_33 = arith.constant 0.000000e+00 : f32
    %115 = vector.broadcast %cst_33 : f32 to vector<1x196xf32>
    %116 = arith.select %114, %115, %108 : vector<1x196xi1>, vector<1x196xf32>
    %c195_i32 = arith.constant 195 : i32
    %117 = vector.broadcast %c195_i32 : i32 to vector<1x196xi32>
    %118 = arith.cmpi eq, %6, %117 : vector<1x196xi32>
    %cst_34 = arith.constant 0.000000e+00 : f32
    %119 = vector.broadcast %cst_34 : f32 to vector<1x196xf32>
    %120 = arith.select %118, %119, %112 : vector<1x196xi1>, vector<1x196xf32>
    %cst_35 = arith.constant 0.000000e+00 : f32
    %121 = vector.broadcast %cst_35 : f32 to vector<48x196xf32>
    %c0_36 = arith.constant 0 : index
    %c0_37 = arith.constant 0 : index
    %122 = vector.load %arg2[%c0_36, %c0_37] : memref<432x192xf32, #tpu.memory_space<vmem>>, vector<144x192xf32>
    %c0_38 = arith.constant 0 : index
    %c0_39 = arith.constant 0 : index
    %123 = vector.load %arg4[%c0_38, %c0_39] : memref<192x226xf32, #tpu.memory_space<vmem>>, vector<192x226xf32>
    %cst_40 = arith.constant dense<0.000000e+00> : vector<144x226xf32>
    %124 = tpu.matmul %122, %123, %cst_40 {dimension_numbers = #tpu.dot_dimension_numbers<[1], [0], [0], [1], [0, 0, 1, 1], [], []>} : vector<144x192xf32>, vector<192x226xf32>, vector<144x226xf32> -> vector<144x226xf32>
    %125 = vector.extract_strided_slice %124 {offsets = [0, 0], sizes = [48, 196], strides = [1, 1]} : vector<144x226xf32> to vector<48x196xf32>
    %126 = vector.broadcast %116 : vector<1x196xf32> to vector<48x196xf32>
    %127 = arith.mulf %125, %126 : vector<48x196xf32>
    %128 = arith.addf %121, %127 : vector<48x196xf32>
    %129 = vector.extract_strided_slice %124 {offsets = [48, 1], sizes = [48, 196], strides = [1, 1]} : vector<144x226xf32> to vector<48x196xf32>
    %130 = arith.addf %128, %129 : vector<48x196xf32>
    %131 = vector.extract_strided_slice %124 {offsets = [96, 2], sizes = [48, 196], strides = [1, 1]} : vector<144x226xf32> to vector<48x196xf32>
    %132 = vector.broadcast %120 : vector<1x196xf32> to vector<48x196xf32>
    %133 = arith.mulf %131, %132 : vector<48x196xf32>
    %134 = arith.addf %130, %133 : vector<48x196xf32>
    %c144 = arith.constant 144 : index
    %c0_41 = arith.constant 0 : index
    %135 = vector.load %arg2[%c144, %c0_41] : memref<432x192xf32, #tpu.memory_space<vmem>>, vector<144x192xf32>
    %c0_42 = arith.constant 0 : index
    %c0_43 = arith.constant 0 : index
    %136 = vector.load %arg4[%c0_42, %c0_43] : memref<192x226xf32, #tpu.memory_space<vmem>>, vector<192x226xf32>
    %cst_44 = arith.constant dense<0.000000e+00> : vector<144x226xf32>
    %137 = tpu.matmul %135, %136, %cst_44 {dimension_numbers = #tpu.dot_dimension_numbers<[1], [0], [0], [1], [0, 0, 1, 1], [], []>} : vector<144x192xf32>, vector<192x226xf32>, vector<144x226xf32> -> vector<144x226xf32>
    %138 = vector.extract_strided_slice %137 {offsets = [0, 14], sizes = [48, 196], strides = [1, 1]} : vector<144x226xf32> to vector<48x196xf32>
    %139 = vector.broadcast %116 : vector<1x196xf32> to vector<48x196xf32>
    %140 = arith.mulf %138, %139 : vector<48x196xf32>
    %141 = arith.addf %134, %140 : vector<48x196xf32>
    %142 = vector.extract_strided_slice %137 {offsets = [48, 15], sizes = [48, 196], strides = [1, 1]} : vector<144x226xf32> to vector<48x196xf32>
    %143 = arith.addf %141, %142 : vector<48x196xf32>
    %144 = vector.extract_strided_slice %137 {offsets = [96, 16], sizes = [48, 196], strides = [1, 1]} : vector<144x226xf32> to vector<48x196xf32>
    %145 = vector.broadcast %120 : vector<1x196xf32> to vector<48x196xf32>
    %146 = arith.mulf %144, %145 : vector<48x196xf32>
    %147 = arith.addf %143, %146 : vector<48x196xf32>
    %c288 = arith.constant 288 : index
    %c0_45 = arith.constant 0 : index
    %148 = vector.load %arg2[%c288, %c0_45] : memref<432x192xf32, #tpu.memory_space<vmem>>, vector<144x192xf32>
    %c0_46 = arith.constant 0 : index
    %c0_47 = arith.constant 0 : index
    %149 = vector.load %arg4[%c0_46, %c0_47] : memref<192x226xf32, #tpu.memory_space<vmem>>, vector<192x226xf32>
    %cst_48 = arith.constant dense<0.000000e+00> : vector<144x226xf32>
    %150 = tpu.matmul %148, %149, %cst_48 {dimension_numbers = #tpu.dot_dimension_numbers<[1], [0], [0], [1], [0, 0, 1, 1], [], []>} : vector<144x192xf32>, vector<192x226xf32>, vector<144x226xf32> -> vector<144x226xf32>
    %151 = vector.extract_strided_slice %150 {offsets = [0, 28], sizes = [48, 196], strides = [1, 1]} : vector<144x226xf32> to vector<48x196xf32>
    %152 = vector.broadcast %116 : vector<1x196xf32> to vector<48x196xf32>
    %153 = arith.mulf %151, %152 : vector<48x196xf32>
    %154 = arith.addf %147, %153 : vector<48x196xf32>
    %155 = vector.extract_strided_slice %150 {offsets = [48, 29], sizes = [48, 196], strides = [1, 1]} : vector<144x226xf32> to vector<48x196xf32>
    %156 = arith.addf %154, %155 : vector<48x196xf32>
    %157 = vector.extract_strided_slice %150 {offsets = [96, 30], sizes = [48, 196], strides = [1, 1]} : vector<144x226xf32> to vector<48x196xf32>
    %158 = vector.broadcast %120 : vector<1x196xf32> to vector<48x196xf32>
    %159 = arith.mulf %157, %158 : vector<48x196xf32>
    %160 = arith.addf %156, %159 : vector<48x196xf32>
    %c0_49 = arith.constant 0 : index
    %c0_50 = arith.constant 0 : index
    %161 = vector.load %arg3[%c0_49, %c0_50] : memref<48x196xf32, #tpu.memory_space<vmem>>, vector<48x196xf32>
    tpu.vector_store %arg3[%c0_49, %c0_50], %160 {strides = array<i32>} : memref<48x196xf32, #tpu.memory_space<vmem>>, vector<48x196xf32>,
    return
  }
  func.func @transform_0(%arg0: i32) -> (i32, i32) {
    %c0_i32 = arith.constant 0 : i32
    %c0_i32_0 = arith.constant 0 : i32
    %c0_i32_1 = arith.constant 0 : i32
    return %c0_i32, %c0_i32_0 : i32, i32
  }
  func.func @transform_1(%arg0: i32) -> (i32, i32) {
    %c0_i32 = arith.constant 0 : i32
    %c0_i32_0 = arith.constant 0 : i32
    %c0_i32_1 = arith.constant 0 : i32
    return %c0_i32, %c0_i32_0 : i32, i32
  }
  func.func @transform_2(%arg0: i32) -> (i32, i32) {
    %c0_i32 = arith.constant 0 : i32
    %c0_i32_0 = arith.constant 0 : i32
    %c0_i32_1 = arith.constant 0 : i32
    return %c0_i32, %c0_i32_0 : i32, i32
  }
}

</mosaic_0001>

<bundles_post_ra>
// kernel: relu_conv2d.1
= control target key start
LH: loop header
LB: loop body
LE: loop exit
PB: predicated region body
PF: predicated region fallthrough
CT: control target
= control target key end

     0   :  { %s2562_s15 = smov 15   ;;  %v2563_v62 = vmov 0.0   ;;  %vm373_vm0 = vcmask 1047672   ;;  %vm12_vm1 = vcmask 801792   ;;  %vm300_vm2 = vcmask 121856   ;;  %s2565_s19 = smov 2   ;;  %s4712_s0 = inlined_call_operand.vmem [shape: f32[192,196], index: 0, kind: input, shape index: {}]   ;;  %s4713_s1 = inlined_call_operand.vmem [shape: f32[432,192], index: 1, kind: input, shape index: {}]   ;;  %s4714_s2 = inlined_call_operand.vmem [shape: f32[48,196], index: 2, kind: output, shape index: {}]  }
   0x1   :  { %v106_v0 = vld [vmem:[%s4712_s0 + $0x170] sm:$0xff]  ;;  %v88_v4 = vld [vmem:[%s4712_s0 + $0xe0] sm:$0xff]  ;;  %v107_v6 = vld [vmem:[%s4712_s0 + $0x178] sm:$0xff]  ;;  %40 = vst [vmem:[#allocation2 + $0xe0] sm:$0xff] %v2563_v62  ;;  %vm375_vm3 = vcmask 678912   ;;  %vm622_vm4 = vcmask 523264  }
   0x2   :  { %v90_v1 = vld [vmem:[%s4712_s0 + $0xf0] sm:$0xff]  ;;  %v154_v2 = vmax.f32 %v106_v0, 0.0  ;;  %v136_v5 = vmax.f32 %v88_v4, 0.0  ;;  %v91_v7 = vld [vmem:[%s4712_s0 + $0xf8] sm:$0xff]  ;;  %v89_v8 = vld [vmem:[%s4712_s0 + $0xe8] sm:$0xff]  ;;  %v155_v9 = vmax.f32 %v107_v6, 0.0 }
   0x3   :  { %v138_v3 = vmax.f32 %v90_v1, 0.0  ;;  %v139_v10 = vmax.f32 %v91_v7, 0.0  ;;  %v137_v11 = vmax.f32 %v89_v8, 0.0  ;;  %v105_v12 = vld [vmem:[%s4712_s0 + $0x168] sm:$0xff]  ;;  %v104_v13 = vld [vmem:[%s4712_s0 + $0x160] sm:$0xff]  ;;  %v86_v14 = vld [vmem:[%s4712_s0 + $0xd0] sm:$0xff] }
   0x4   :  { %296 = vrot.lane.b32.xlu1 %v154_v2, %s2562_s15  ;;  %260 = vrot.lane.b32.xlu2 %v136_v5, %s2562_s15  ;;  %v153_v15 = vmax.f32 %v105_v12, 0.0  ;;  %v152_v16 = vmax.f32 %v104_v13, 0.0  ;;  %v134_v17 = vmax.f32 %v86_v14, 0.0  ;;  %v102_v18 = vld [vmem:[%s4712_s0 + $0x150] sm:$0xff]  ;;  %v87_v19 = vld [vmem:[%s4712_s0 + $0xd8] sm:$0xff]  ;;  %11 = vst [vmem:[#allocation2] sm:$0xff] %v2563_v62 }
   0x5   :  { %264 = vrot.lane.b32.xlu0 %v138_v3, %s2562_s15  ;;  %v103_v20 = vld [vmem:[%s4712_s0 + $0x158] sm:$0xff]  ;;  %v150_v21 = vmax.f32 %v102_v18, 0.0  ;;  %v135_v22 = vmax.f32 %v87_v19, 0.0  ;;  %v85_v24 = vld [vmem:[%s4712_s0 + $0xc8] sm:$0xff]  ;;  %v84_v25 = vld [vmem:[%s4712_s0 + $0xc0] sm:$0xff]  ;;  %14 = vst [vmem:[#allocation2 + $0x10] sm:$0xff] %v2563_v62 }
   0x6   :  { %v151_v23 = vmax.f32 %v103_v20, 0.0  ;;  %v100_v26 = vld [vmem:[%s4712_s0 + $0x140] sm:$0xff]  ;;  %v133_v27 = vmax.f32 %v85_v24, 0.0  ;;  %v132_v28 = vmax.f32 %v84_v25, 0.0  ;;  %v101_v30 = vld [vmem:[%s4712_s0 + $0x148] sm:$0xff]  ;;  %v82_v31 = vld [vmem:[%s4712_s0 + $0xb0] sm:$0xff] }
   0x7   :  { %v148_v29 = vmax.f32 %v100_v26, 0.0  ;;  %v83_v32 = vld [vmem:[%s4712_s0 + $0xb8] sm:$0xff]  ;;  %v149_v33 = vmax.f32 %v101_v30, 0.0  ;;  %v130_v34 = vmax.f32 %v82_v31, 0.0  ;;  %v98_v36 = vld [vmem:[%s4712_s0 + $0x130] sm:$0xff]  ;;  %v80_v38 = vld [vmem:[%s4712_s0 + $0xa0] sm:$0xff] }
   0x8   :  { %v131_v35 = vmax.f32 %v83_v32, 0.0  ;;  %v99_v37 = vld [vmem:[%s4712_s0 + $0x138] sm:$0xff]  ;;  %v146_v39 = vmax.f32 %v98_v36, 0.0  ;;  %v128_v41 = vmax.f32 %v80_v38, 0.0  ;;  %v96_v42 = vld [vmem:[%s4712_s0 + $0x120] sm:$0xff]  ;;  %v81_v43 = vld [vmem:[%s4712_s0 + $0xa8] sm:$0xff] }
   0x9   :  { %v147_v40 = vmax.f32 %v99_v37, 0.0  ;;  %v97_v44 = vld [vmem:[%s4712_s0 + $0x128] sm:$0xff]  ;;  %v144_v45 = vmax.f32 %v96_v42, 0.0  ;;  %v129_v46 = vmax.f32 %v81_v43, 0.0  ;;  %v79_v48 = vld [vmem:[%s4712_s0 + $0x98] sm:$0xff]  ;;  %v78_v49 = vld [vmem:[%s4712_s0 + $0x90] sm:$0xff] }
   0xa   :  { %v145_v47 = vmax.f32 %v97_v44, 0.0  ;;  %v94_v50 = vld [vmem:[%s4712_s0 + $0x110] sm:$0xff]  ;;  %v127_v51 = vmax.f32 %v79_v48, 0.0  ;;  %v126_v52 = vmax.f32 %v78_v49, 0.0  ;;  %v95_v54 = vld [vmem:[%s4712_s0 + $0x118] sm:$0xff]  ;;  %v76_v55 = vld [vmem:[%s4712_s0 + $0x80] sm:$0xff] }
   0xb   :  { %v142_v53 = vmax.f32 %v94_v50, 0.0  ;;  %v77_v56 = vld [vmem:[%s4712_s0 + $0x88] sm:$0xff]  ;;  %v143_v57 = vmax.f32 %v95_v54, 0.0  ;;  %v124_v58 = vmax.f32 %v76_v55, 0.0  ;;  %v92_v60 = vld [vmem:[%s4712_s0 + $0x100] sm:$0xff]  ;;  %v74_v63 = vld [vmem:[%s4712_s0 + $0x70] sm:$0xff] }
   0xc   :  { %298 = vrot.lane.b32.xlu1 %v155_v9, %s2562_s15  ;;  %262 = vrot.lane.b32.xlu2 %v137_v11, %s2562_s15  ;;  %v125_v59 = vmax.f32 %v77_v56, 0.0  ;;  %v93_v61 = vld [vmem:[%s4712_s0 + $0x108] sm:$0xff]  ;;  %v140_v0 = vmax.f32 %v92_v60, 0.0  ;;  %16 = vst [vmem:[#allocation2 + $0x20] sm:$0xff] %v2563_v62  ;;  %v122_v2 = vmax.f32 %v74_v63, 0.0  ;;  %v75_v3 = vld [vmem:[%s4712_s0 + $0x78] sm:$0xff] }
   0xd   :  { %266 = vrot.lane.b32.xlu0 %v139_v10, %s2562_s15  ;;  %v141_v1 = vmax.f32 %v93_v61, 0.0  ;;  %18 = vst [vmem:[#allocation2 + $0x30] sm:$0xff] %v2563_v62  ;;  %v72_v4 = vld [vmem:[%s4712_s0 + $0x60] sm:$0xff]  ;;  %v73_v5 = vld [vmem:[%s4712_s0 + $0x68] sm:$0xff]  ;;  %v123_v6 = vmax.f32 %v75_v3, 0.0  ;;  %v71_v9 = vld [vmem:[%s4712_s0 + $0x58] sm:$0xff] }
   0xe   :  { %20 = vst [vmem:[#allocation2 + $0x40] sm:$0xff] %v2563_v62  ;;  %v120_v7 = vmax.f32 %v72_v4, 0.0  ;;  %v121_v8 = vmax.f32 %v73_v5, 0.0  ;;  %v70_v10 = vld [vmem:[%s4712_s0 + $0x50] sm:$0xff]  ;;  %v68_v11 = vld [vmem:[%s4712_s0 + $0x40] sm:$0xff]  ;;  %v119_v12 = vmax.f32 %v71_v9, 0.0 }
   0xf   :  { %22 = vst [vmem:[#allocation2 + $0x50] sm:$0xff] %v2563_v62  ;;  %v118_v13 = vmax.f32 %v70_v10, 0.0  ;;  %v67_v18 = vld [vmem:[%s4712_s0 + $0x38] sm:$0xff]  ;;  %v65_v24 = vld [vmem:[%s4712_s0 + $0x28] sm:$0xff]  ;;  %v64_v25 = vld [vmem:[%s4712_s0 + $0x20] sm:$0xff]  ;;  %s2566_s14 = smov 14  }
  0x10   :  { %24 = vst [vmem:[#allocation2 + $0x60] sm:$0xff] %v2563_v62  ;;  %v62_v26 = vld [vmem:[%s4712_s0 + $0x10] sm:$0xff]  ;;  %v63_v31 = vld [vmem:[%s4712_s0 + $0x18] sm:$0xff]  ;;  %v60_v32 = vld [vmem:[%s4712_s0] sm:$0xff]  ;;  %s2567_s30 = smov 28   ;;  %s2568_s3 = smov 16  }
  0x11   :  { %26 = vst [vmem:[#allocation2 + $0x70] sm:$0xff] %v2563_v62  ;;  %v110_v30 = vmax.f32 %v62_v26, 0.0  ;;  %v111_v36 = vmax.f32 %v63_v31, 0.0  ;;  %v108_v37 = vmax.f32 %v60_v32, 0.0  ;;  %s2569_s8 = smov 30   ;;  %s2571_s22 = smov 126  }
  0x12   :  { %28 = vst [vmem:[#allocation2 + $0x80] sm:$0xff] %v2563_v62  ;;  %s2572_s13 = smov 114   ;;  %s2573_s5 = smov 113  }
  0x13   :  { %30 = vst [vmem:[#allocation2 + $0x90] sm:$0xff] %v2563_v62  ;;  %s2574_s10 = smov 112   ;;  %s2577_s20 = smov 98  }
  0x14   :  { %294 = vrot.lane.b32.xlu1 %v153_v15, %s2562_s15  ;;  %256 = vrot.lane.b32.xlu2 %v134_v17, %s2562_s15  ;;  %32 = vst [vmem:[#allocation2 + $0xa0] sm:$0xff] %v2563_v62  ;;  %v116_v15 = vmax.f32 %v68_v11, 0.0  ;;  %v66_v17 = vld [vmem:[%s4712_s0 + $0x30] sm:$0xff] }
  0x15   :  { %292 = vrot.lane.b32.xlu0 %v152_v16, %s2562_s15  ;;  %34 = vst [vmem:[#allocation2 + $0xb0] sm:$0xff] %v2563_v62  ;;  %v69_v16 = vld [vmem:[%s4712_s0 + $0x48] sm:$0xff]  ;;  %v114_v20 = vmax.f32 %v66_v17, 0.0 }
  0x16   :  { %36 = vst [vmem:[#allocation2 + $0xc0] sm:$0xff] %v2563_v62  ;;  %v117_v19 = vmax.f32 %v69_v16, 0.0 }
  0x17   :  { %38 = vst [vmem:[#allocation2 + $0xd0] sm:$0xff] %v2563_v62 }
  0x18   :  { %42 = vst [vmem:[#allocation2 + $0xf0] sm:$0xff] %v2563_v62 }
  0x19   :  { %44 = vst [vmem:[#allocation2 + $0x100] sm:$0xff] %v2563_v62 }
  0x1a   :  { %46 = vst [vmem:[#allocation2 + $0x110] sm:$0xff] %v2563_v62 }
  0x1b   :  { %48 = vst [vmem:[#allocation2 + $0x120] sm:$0xff] %v2563_v62 }
  0x1c   :  { %288 = vrot.lane.b32.xlu1 %v150_v21, %s2562_s15  ;;  %290 = vrot.lane.b32.xlu2 %v151_v23, %s2562_s15  ;;  %50 = vst [vmem:[#allocation2 + $0x130] sm:$0xff] %v2563_v62  ;;  %v115_v23 = vmax.f32 %v67_v18, 0.0 }
  0x1d   :  { %258 = vrot.lane.b32.xlu0 %v135_v22, %s2562_s15  ;;  %52 = vst [vmem:[#allocation2 + $0x140] sm:$0xff] %v2563_v62 }
  0x1e   :  { %54 = vst [vmem:[#allocation2 + $0x150] sm:$0xff] %v2563_v62 }
  0x1f   :  { %56 = vst [vmem:[#allocation2 + $0x160] sm:$0xff] %v2563_v62 }
  0x20   :  { %58 = vst [vmem:[#allocation2 + $0x170] sm:$0xff] %v2563_v62 }
  0x21   :  { %41 = vst.msk [vmem:[#allocation2 + $0xe8] sm:$0xff] %vm12_vm1, %v2563_v62 }
  0x22   :  { %13 = vst.msk [vmem:[#allocation2 + $0x8] sm:$0xff] %vm12_vm1, %v2563_v62 }
  0x23   :  { %15 = vst.msk [vmem:[#allocation2 + $0x18] sm:$0xff] %vm12_vm1, %v2563_v62 }
  0x24   :  { %254 = vrot.lane.b32.xlu1 %v133_v27, %s2562_s15  ;;  %284 = vrot.lane.b32.xlu2 %v148_v29, %s2562_s15  ;;  %17 = vst.msk [vmem:[#allocation2 + $0x28] sm:$0xff] %vm12_vm1, %v2563_v62  ;;  %v113_v27 = vmax.f32 %v65_v24, 0.0 }
  0x25   :  { %252 = vrot.lane.b32.xlu0 %v132_v28, %s2562_s15  ;;  %19 = vst.msk [vmem:[#allocation2 + $0x38] sm:$0xff] %vm12_vm1, %v2563_v62  ;;  %v112_v28 = vmax.f32 %v64_v25, 0.0 }
  0x26   :  { %21 = vst.msk [vmem:[#allocation2 + $0x48] sm:$0xff] %vm12_vm1, %v2563_v62 }
  0x27   :  { %23 = vst.msk [vmem:[#allocation2 + $0x58] sm:$0xff] %vm12_vm1, %v2563_v62 }
  0x28   :  { %25 = vst.msk [vmem:[#allocation2 + $0x68] sm:$0xff] %vm12_vm1, %v2563_v62 }
  0x29   :  { %27 = vst.msk [vmem:[#allocation2 + $0x78] sm:$0xff] %vm12_vm1, %v2563_v62 }
  0x2a   :  { %29 = vst.msk [vmem:[#allocation2 + $0x88] sm:$0xff] %vm12_vm1, %v2563_v62 }
  0x2b   :  { %31 = vst.msk [vmem:[#allocation2 + $0x98] sm:$0xff] %vm12_vm1, %v2563_v62 }
  0x2c   :  { %248 = vrot.lane.b32.xlu1 %v130_v34, %s2562_s15  ;;  %250 = vrot.lane.b32.xlu2 %v131_v35, %s2562_s15  ;;  %33 = vst.msk [vmem:[#allocation2 + $0xa8] sm:$0xff] %vm12_vm1, %v2563_v62  ;;  %v61_v35 = vld [vmem:[%s4712_s0 + $0x8] sm:$0xff] }
  0x2d   :  { %286 = vrot.lane.b32.xlu0 %v149_v33, %s2562_s15  ;;  %35 = vst.msk [vmem:[#allocation2 + $0xb8] sm:$0xff] %vm12_vm1, %v2563_v62 }
  0x2e   :  { %37 = vst.msk [vmem:[#allocation2 + $0xc8] sm:$0xff] %vm12_vm1, %v2563_v62 }
  0x2f   :  { %39 = vst.msk [vmem:[#allocation2 + $0xd8] sm:$0xff] %vm12_vm1, %v2563_v62 }
  0x30   :  { %43 = vst.msk [vmem:[#allocation2 + $0xf8] sm:$0xff] %vm12_vm1, %v2563_v62 }
  0x31   :  { %45 = vst.msk [vmem:[#allocation2 + $0x108] sm:$0xff] %vm12_vm1, %v2563_v62 }
  0x32   :  { %47 = vst.msk [vmem:[#allocation2 + $0x118] sm:$0xff] %vm12_vm1, %v2563_v62 }
  0x33   :  { %49 = vst.msk [vmem:[#allocation2 + $0x128] sm:$0xff] %vm12_vm1, %v2563_v62 }
  0x34   :  { %282 = vrot.lane.b32.xlu1 %v147_v40, %s2562_s15  ;;  %244 = vrot.lane.b32.xlu2 %v128_v41, %s2562_s15  ;;  %51 = vst.msk [vmem:[#allocation2 + $0x138] sm:$0xff] %vm12_vm1, %v2563_v62 }
  0x35   :  { %280 = vrot.lane.b32.xlu0 %v146_v39, %s2562_s15  ;;  %v109_v39 = vmax.f32 %v61_v35, 0.0  ;;  %53 = vst.msk [vmem:[#allocation2 + $0x148] sm:$0xff] %vm12_vm1, %v2563_v62 }
  0x36   :  { %55 = vst.msk [vmem:[#allocation2 + $0x158] sm:$0xff] %vm12_vm1, %v2563_v62 }
  0x37   :  { %57 = vst.msk [vmem:[#allocation2 + $0x168] sm:$0xff] %vm12_vm1, %v2563_v62 }
  0x38   :  { %59 = vst.msk [vmem:[#allocation2 + $0x178] sm:$0xff] %vm12_vm1, %v2563_v62 }
  0x3c   :  { %276 = vrot.lane.b32.xlu1 %v144_v45, %s2562_s15  ;;  %278 = vrot.lane.b32.xlu2 %v145_v47, %s2562_s15 }
  0x3d   :  { %246 = vrot.lane.b32.xlu0 %v129_v46, %s2562_s15 }
  0x44   :  { %242 = vrot.lane.b32.xlu1 %v127_v51, %s2562_s15  ;;  %272 = vrot.lane.b32.xlu2 %v142_v53, %s2562_s15 }
  0x45   :  { %240 = vrot.lane.b32.xlu0 %v126_v52, %s2562_s15 }
  0x4c   :  { %236 = vrot.lane.b32.xlu1 %v124_v58, %s2562_s15  ;;  %238 = vrot.lane.b32.xlu2 %v125_v59, %s2562_s15 }
  0x4d   :  { %274 = vrot.lane.b32.xlu0 %v143_v57, %s2562_s15 }
  0x54   :  { %270 = vrot.lane.b32.xlu1 %v141_v1, %s2562_s15  ;;  %232 = vrot.lane.b32.xlu2 %v122_v2, %s2562_s15 }
  0x55   :  { %268 = vrot.lane.b32.xlu0 %v140_v0, %s2562_s15 }
  0x5c   :  { %228 = vrot.lane.b32.xlu1 %v120_v7, %s2562_s15  ;;  %230 = vrot.lane.b32.xlu2 %v121_v8, %s2562_s15 }
  0x5d   :  { %234 = vrot.lane.b32.xlu0 %v123_v6, %s2562_s15 }
  0x5e   :  { %v261_v14 = vpop.permute.xlu2 %260 }
  0x5f   :  { %403 = vst.msk [vmem:[#allocation2 + $0xe0] sm:$0xff] %vm373_vm0, %v261_v14 }
  0x64   :  { %226 = vrot.lane.b32.xlu1 %v119_v12, %s2562_s15  ;;  %220 = vrot.lane.b32.xlu2 %v116_v15, %s2562_s15 }
  0x65   :  { %224 = vrot.lane.b32.xlu0 %v118_v13, %s2562_s15 }
  0x66   :  { %v263_v21 = vpop.permute.xlu2 %262  ;;  %v2868_v46 = vld [vmem:[#allocation2 + $0xe0] sm:$0xff] }
  0x67   :  { %v315_v22 = vsel %vm300_vm2, %v261_v14, %v263_v21 }
  0x68   :  { %404 = vst.msk [vmem:[#allocation2 + $0xe8] sm:$0xff] %vm375_vm3, %v315_v22 }
  0x6c   :  { %216 = vrot.lane.b32.xlu1 %v114_v20, %s2562_s15  ;;  %218 = vrot.lane.b32.xlu2 %v115_v23, %s2562_s15 }
  0x6d   :  { %222 = vrot.lane.b32.xlu0 %v117_v19, %s2562_s15 }
  0x6e   :  { %v2817_v29 = vpop.permute.xlu2 %256 }
  0x6f   :  { %401 = vst.msk [vmem:[#allocation2 + $0xd0] sm:$0xff] %vm373_vm0, %v2817_v29  ;;  %v2891_v55 = vld [vmem:[#allocation2 + $0xe8] sm:$0xff] }
  0x74   :  { %214 = vrot.lane.b32.xlu1 %v113_v27, %s2562_s15  ;;  %208 = vrot.lane.b32.xlu2 %v110_v30, %s2562_s15 }
  0x75   :  { %212 = vrot.lane.b32.xlu0 %v112_v28, %s2562_s15 }
  0x76   :  { %v297_v33 = vpop.permute.xlu1 %296  ;;  %v291_v38 = vpop.permute.xlu2 %290  ;;  %v2889_v54 = vld [vmem:[#allocation2 + $0xd0] sm:$0xff] }
  0x77   :  { %v265_v34 = vpop.permute.xlu0 %264  ;;  %421 = vst.msk [vmem:[#allocation2 + $0x170] sm:$0xff] %vm373_vm0, %v297_v33 }
  0x78   :  { %405 = vst.msk [vmem:[#allocation2 + $0xf0] sm:$0xff] %vm373_vm0, %v265_v34 }
  0x7c   :  { %204 = vrot.lane.b32.xlu1 %v108_v37, %s2562_s15  ;;  %206 = vrot.lane.b32.xlu2 %v109_v39, %s2562_s15 }
  0x7d   :  { %210 = vrot.lane.b32.xlu0 %v111_v36, %s2562_s15  ;;  %s2570_s15 = smov 127  }
  0x7e   :  { %v299_v40 = vpop.permute.xlu1 %298  ;;  %v2859_v42 = vld [vmem:[#allocation2 + $0x170] sm:$0xff]  ;;  %v285_v47 = vpop.permute.xlu2 %284 }
  0x7f   :  { %v267_v41 = vpop.permute.xlu0 %266  ;;  %v324_v43 = vsel %vm300_vm2, %v297_v33, %v299_v40  ;;  %v2866_v45 = vld [vmem:[#allocation2 + $0xf0] sm:$0xff]  ;;  %756 = vmatpush.msra.mxu1 %v2859_v42  ;;  %415 = vst.msk [vmem:[#allocation2 + $0x140] sm:$0xff] %vm373_vm0, %v285_v47 }
  0x80   :  { %v316_v44 = vsel %vm300_vm2, %v265_v34, %v267_v41  ;;  %677 = vmatpush.msra.mxu0 %v2866_v45  ;;  %422 = vst.msk [vmem:[#allocation2 + $0x178] sm:$0xff] %vm375_vm3, %v324_v43 }
  0x81   :  { %406 = vst.msk [vmem:[#allocation2 + $0xf8] sm:$0xff] %vm375_vm3, %v316_v44 }
  0x82   :  { %678 = vmatpush.msra.mxu0 %v2868_v46 }
  0x84   :  { %679 = vmatpush.msra.mxu0 %v2889_v54 }
  0x86   :  { %v295_v48 = vpop.permute.xlu1 %294  ;;  %v251_v52 = vpop.permute.xlu2 %250  ;;  %v2910_v2 = vld [vmem:[#allocation2 + $0x140] sm:$0xff] }
  0x87   :  { %v293_v49 = vpop.permute.xlu0 %292  ;;  %v2883_v51 = vld [vmem:[#allocation2 + $0x178] sm:$0xff] }
  0x88   :  { %v323_v50 = vsel %vm300_vm2, %v293_v49, %v295_v48  ;;  %419 = vst.msk [vmem:[#allocation2 + $0x160] sm:$0xff] %vm373_vm0, %v293_v49  ;;  %v2885_v53 = vld [vmem:[#allocation2 + $0xf8] sm:$0xff]  ;;  %898 = vmatpush.msra.mxu3 %v2883_v51 }
  0x89   :  { %420 = vst.msk [vmem:[#allocation2 + $0x168] sm:$0xff] %vm375_vm3, %v323_v50  ;;  %819 = vmatpush.msra.mxu2 %v2885_v53 }
  0x8b   :  { %820 = vmatpush.msra.mxu2 %v2891_v55 }
  0x8e   :  { %v289_v56 = vpop.permute.xlu1 %288  ;;  %v245_v62 = vpop.permute.xlu2 %244 }
  0x8f   :  { %v259_v57 = vpop.permute.xlu0 %258  ;;  %v2895_v58 = vld [vmem:[#allocation2 + $0x160] sm:$0xff]  ;;  %417 = vst.msk [vmem:[#allocation2 + $0x150] sm:$0xff] %vm373_vm0, %v289_v56  ;;  %v322_v61 = vsel %vm300_vm2, %v289_v56, %v291_v38 }
  0x90   :  { %v314_v59 = vsel %vm300_vm2, %v2817_v29, %v259_v57  ;;  %757 = vmatpush.msra.mxu1 %v2895_v58  ;;  %v2901_v60 = vld [vmem:[#allocation2 + $0x168] sm:$0xff]  ;;  %418 = vst.msk [vmem:[#allocation2 + $0x158] sm:$0xff] %vm375_vm3, %v322_v61 }
  0x91   :  { %402 = vst.msk [vmem:[#allocation2 + $0xd8] sm:$0xff] %vm375_vm3, %v314_v59  ;;  %899 = vmatpush.msra.mxu3 %v2901_v60  ;;  %v539_v61 = vld [vmem:[%s4713_s1 + $0x8] sm:$0xff] }
  0x92   :  { %395 = vst.msk [vmem:[#allocation2 + $0xa0] sm:$0xff] %vm373_vm0, %v245_v62 }
  0x96   :  { %v255_v63 = vpop.permute.xlu1 %254  ;;  %v2908_v1 = vld [vmem:[#allocation2 + $0x150] sm:$0xff]  ;;  %v279_v6 = vpop.permute.xlu2 %278 }
  0x97   :  { %v253_v0 = vpop.permute.xlu0 %252  ;;  %758 = vmatpush.msra.mxu1 %v2908_v1  ;;  %v2919_v5 = vld [vmem:[#allocation2 + $0x158] sm:$0xff] }
  0x98   :  { %v313_v3 = vsel %vm300_vm2, %v253_v0, %v255_v63  ;;  %399 = vst.msk [vmem:[#allocation2 + $0xc0] sm:$0xff] %vm373_vm0, %v253_v0  ;;  %v2914_v4 = vld [vmem:[#allocation2 + $0xd8] sm:$0xff]  ;;  %900 = vmatpush.msra.mxu3 %v2919_v5 }
  0x99   :  { %400 = vst.msk [vmem:[#allocation2 + $0xc8] sm:$0xff] %vm375_vm3, %v313_v3  ;;  %821 = vmatpush.msra.mxu2 %v2914_v4  ;;  %759 = vmatpush.msra.mxu1 %v2910_v2  ;;  %v2937_v17 = vld [vmem:[#allocation2 + $0xa0] sm:$0xff] }
  0x9e   :  { %v249_v8 = vpop.permute.xlu1 %248  ;;  %v273_v13 = vpop.permute.xlu2 %272 }
  0x9f   :  { %v287_v7 = vpop.permute.xlu0 %286  ;;  %v2923_v9 = vld [vmem:[#allocation2 + $0xc0] sm:$0xff]  ;;  %397 = vst.msk [vmem:[#allocation2 + $0xb0] sm:$0xff] %vm373_vm0, %v249_v8  ;;  %v312_v12 = vsel %vm300_vm2, %v249_v8, %v251_v52 }
  0xa0   :  { %v321_v10 = vsel %vm300_vm2, %v285_v47, %v287_v7  ;;  %680 = vmatpush.msra.mxu0 %v2923_v9  ;;  %v2928_v11 = vld [vmem:[#allocation2 + $0xc8] sm:$0xff]  ;;  %398 = vst.msk [vmem:[#allocation2 + $0xb8] sm:$0xff] %vm375_vm3, %v312_v12 }
  0xa1   :  { %416 = vst.msk [vmem:[#allocation2 + $0x148] sm:$0xff] %vm375_vm3, %v321_v10  ;;  %822 = vmatpush.msra.mxu2 %v2928_v11  ;;  %v541_v10 = vld [vmem:[%s4713_s1 + $0x18] sm:$0xff] }
  0xa2   :  { %409 = vst.msk [vmem:[#allocation2 + $0x110] sm:$0xff] %vm373_vm0, %v273_v13 }
  0xa6   :  { %v283_v15 = vpop.permute.xlu1 %282  ;;  %v2935_v16 = vld [vmem:[#allocation2 + $0xb0] sm:$0xff]  ;;  %v239_v21 = vpop.permute.xlu2 %238 }
  0xa7   :  { %v281_v14 = vpop.permute.xlu0 %280  ;;  %681 = vmatpush.msra.mxu0 %v2935_v16  ;;  %v2946_v20 = vld [vmem:[#allocation2 + $0xb8] sm:$0xff] }
  0xa8   :  { %413 = vst.msk [vmem:[#allocation2 + $0x130] sm:$0xff] %vm373_vm0, %v281_v14  ;;  %v320_v18 = vsel %vm300_vm2, %v281_v14, %v283_v15  ;;  %v2941_v19 = vld [vmem:[#allocation2 + $0x148] sm:$0xff]  ;;  %823 = vmatpush.msra.mxu2 %v2946_v20 }
  0xa9   :  { %414 = vst.msk [vmem:[#allocation2 + $0x138] sm:$0xff] %vm375_vm3, %v320_v18  ;;  %901 = vmatpush.msra.mxu3 %v2941_v19  ;;  %682 = vmatpush.msra.mxu0 %v2937_v17  ;;  %v2964_v32 = vld [vmem:[#allocation2 + $0x110] sm:$0xff] }
  0xae   :  { %v277_v22 = vpop.permute.xlu1 %276  ;;  %v233_v28 = vpop.permute.xlu2 %232 }
  0xaf   :  { %v247_v23 = vpop.permute.xlu0 %246  ;;  %v2950_v24 = vld [vmem:[#allocation2 + $0x130] sm:$0xff]  ;;  %411 = vst.msk [vmem:[#allocation2 + $0x120] sm:$0xff] %vm373_vm0, %v277_v22  ;;  %v319_v27 = vsel %vm300_vm2, %v277_v22, %v279_v6 }
  0xb0   :  { %v311_v25 = vsel %vm300_vm2, %v245_v62, %v247_v23  ;;  %760 = vmatpush.msra.mxu1 %v2950_v24  ;;  %v2955_v26 = vld [vmem:[#allocation2 + $0x138] sm:$0xff]  ;;  %412 = vst.msk [vmem:[#allocation2 + $0x128] sm:$0xff] %vm375_vm3, %v319_v27  ;;  %v543_v27 = vld [vmem:[%s4713_s1 + $0x28] sm:$0xff] }
  0xb1   :  { %396 = vst.msk [vmem:[#allocation2 + $0xa8] sm:$0xff] %vm375_vm3, %v311_v25  ;;  %902 = vmatpush.msra.mxu3 %v2955_v26 }
  0xb2   :  { %389 = vst.msk [vmem:[#allocation2 + $0x70] sm:$0xff] %vm373_vm0, %v233_v28 }
  0xb6   :  { %v243_v29 = vpop.permute.xlu1 %242  ;;  %v2962_v31 = vld [vmem:[#allocation2 + $0x120] sm:$0xff]  ;;  %v231_v36 = vpop.permute.xlu2 %230 }
  0xb7   :  { %v241_v30 = vpop.permute.xlu0 %240  ;;  %761 = vmatpush.msra.mxu1 %v2962_v31  ;;  %v2973_v35 = vld [vmem:[#allocation2 + $0x128] sm:$0xff] }
  0xb8   :  { %v310_v33 = vsel %vm300_vm2, %v241_v30, %v243_v29  ;;  %393 = vst.msk [vmem:[#allocation2 + $0x90] sm:$0xff] %vm373_vm0, %v241_v30  ;;  %v2968_v34 = vld [vmem:[#allocation2 + $0xa8] sm:$0xff]  ;;  %903 = vmatpush.msra.mxu3 %v2973_v35 }
  0xb9   :  { %394 = vst.msk [vmem:[#allocation2 + $0x98] sm:$0xff] %vm375_vm3, %v310_v33  ;;  %824 = vmatpush.msra.mxu2 %v2968_v34  ;;  %762 = vmatpush.msra.mxu1 %v2964_v32  ;;  %v2994_v50 = vld [vmem:[#allocation2 + $0x70] sm:$0xff] }
  0xbe   :  { %v237_v38 = vpop.permute.xlu1 %236  ;;  %v2987_v44 = vpop.permute.xlu2 %220 }
  0xbf   :  { %v275_v37 = vpop.permute.xlu0 %274  ;;  %v2977_v39 = vld [vmem:[#allocation2 + $0x90] sm:$0xff]  ;;  %391 = vst.msk [vmem:[#allocation2 + $0x80] sm:$0xff] %vm373_vm0, %v237_v38  ;;  %v309_v43 = vsel %vm300_vm2, %v237_v38, %v239_v21  ;;  %v545_v38 = vld [vmem:[%s4713_s1 + $0x38] sm:$0xff] }
  0xc0   :  { %v318_v40 = vsel %vm300_vm2, %v273_v13, %v275_v37  ;;  %683 = vmatpush.msra.mxu0 %v2977_v39  ;;  %v2982_v41 = vld [vmem:[#allocation2 + $0x98] sm:$0xff]  ;;  %392 = vst.msk [vmem:[#allocation2 + $0x88] sm:$0xff] %vm375_vm3, %v309_v43 }
  0xc1   :  { %410 = vst.msk [vmem:[#allocation2 + $0x118] sm:$0xff] %vm375_vm3, %v318_v40  ;;  %825 = vmatpush.msra.mxu2 %v2982_v41 }
  0xc2   :  { %383 = vst.msk [vmem:[#allocation2 + $0x40] sm:$0xff] %vm373_vm0, %v2987_v44 }
  0xc6   :  { %v271_v48 = vpop.permute.xlu1 %270  ;;  %v2992_v49 = vld [vmem:[#allocation2 + $0x80] sm:$0xff]  ;;  %v219_v59 = vpop.permute.xlu2 %218 }
  0xc7   :  { %v269_v47 = vpop.permute.xlu0 %268  ;;  %684 = vmatpush.msra.mxu0 %v2992_v49  ;;  %v3003_v57 = vld [vmem:[#allocation2 + $0x88] sm:$0xff] }
  0xc8   :  { %407 = vst.msk [vmem:[#allocation2 + $0x100] sm:$0xff] %vm373_vm0, %v269_v47  ;;  %v317_v52 = vsel %vm300_vm2, %v269_v47, %v271_v48  ;;  %v2998_v56 = vld [vmem:[#allocation2 + $0x118] sm:$0xff]  ;;  %826 = vmatpush.msra.mxu2 %v3003_v57  ;;  %v547_v48 = vld [vmem:[%s4713_s1 + $0x48] sm:$0xff] }
  0xc9   :  { %408 = vst.msk [vmem:[#allocation2 + $0x108] sm:$0xff] %vm375_vm3, %v317_v52  ;;  %904 = vmatpush.msra.mxu3 %v2998_v56  ;;  %685 = vmatpush.msra.mxu0 %v2994_v50  ;;  %v3073_v33 = vld [vmem:[#allocation2 + $0x40] sm:$0xff] }
  0xce   :  { %v229_v63 = vpop.permute.xlu1 %228  ;;  %v3021_v8 = vpop.permute.xlu2 %208 }
  0xcf   :  { %v235_v62 = vpop.permute.xlu0 %234  ;;  %v3010_v0 = vld [vmem:[#allocation2 + $0x100] sm:$0xff]  ;;  %387 = vst.msk [vmem:[#allocation2 + $0x60] sm:$0xff] %vm373_vm0, %v229_v63  ;;  %v307_v7 = vsel %vm300_vm2, %v229_v63, %v231_v36 }
  0xd0   :  { %v308_v3 = vsel %vm300_vm2, %v233_v28, %v235_v62  ;;  %763 = vmatpush.msra.mxu1 %v3010_v0  ;;  %v3015_v6 = vld [vmem:[#allocation2 + $0x108] sm:$0xff]  ;;  %388 = vst.msk [vmem:[#allocation2 + $0x68] sm:$0xff] %vm375_vm3, %v307_v7  ;;  %v549_v62 = vld [vmem:[%s4713_s1 + $0x58] sm:$0xff] }
  0xd1   :  { %390 = vst.msk [vmem:[#allocation2 + $0x78] sm:$0xff] %vm375_vm3, %v308_v3  ;;  %2389 = vmatmul.msk.f32.vlgmr.msra.gmra.mxu1 %vm622_vm4, %v539_v61  ;;  %905 = vmatpush.msra.mxu3 %v3015_v6  ;;  %v540_v3 = vld [vmem:[%s4713_s1 + $0x10] sm:$0xff]  ;;  %v561_v7 = vld [vmem:[%s4713_s1 + $0xb8] sm:$0xff] }
  0xd2   :  { %1231 = vmatpush.msrb.mxu1 %v2866_v45  ;;  %2407 = vmatmul.msk.f32.vlgmr.msra.gmra.mxu3 %vm622_vm4, %v539_v61  ;;  %377 = vst.msk [vmem:[#allocation2 + $0x10] sm:$0xff] %vm373_vm0, %v3021_v8 }
  0xd3   :  { %1310 = vmatpush.msrb.mxu3 %v2859_v42 }
  0xd4   :  { %1232 = vmatpush.msrb.mxu1 %v2868_v46 }
  0xd5   :  { %1311 = vmatpush.msrb.mxu3 %v2895_v58 }
  0xd6   :  { %1233 = vmatpush.msrb.mxu1 %v2889_v54  ;;  %v227_v12 = vpop.permute.xlu1 %226  ;;  %v3036_v14 = vld [vmem:[#allocation2 + $0x60] sm:$0xff] }
  0xd7   :  { %1312 = vmatpush.msrb.mxu3 %v2908_v1  ;;  %v225_v13 = vpop.permute.xlu0 %224  ;;  %686 = vmatpush.msra.mxu0 %v3036_v14  ;;  %v3047_v21 = vld [vmem:[#allocation2 + $0x68] sm:$0xff] }
  0xd8   :  { %1234 = vmatpush.msrb.mxu1 %v2923_v9  ;;  %v306_v15 = vsel %vm300_vm2, %v225_v13, %v227_v12  ;;  %385 = vst.msk [vmem:[#allocation2 + $0x50] sm:$0xff] %vm373_vm0, %v225_v13  ;;  %v3041_v18 = vld [vmem:[#allocation2 + $0x78] sm:$0xff]  ;;  %v552_v12 = vld [vmem:[%s4713_s1 + $0x70] sm:$0xff] }
  0xd9   :  { %386 = vst.msk [vmem:[#allocation2 + $0x58] sm:$0xff] %vm375_vm3, %v306_v15  ;;  %1313 = vmatpush.msrb.mxu3 %v2910_v2  ;;  %2390 = vmatmul.msk.f32.gmra.mxu1 %vm622_vm4, %v541_v10  ;;  %v565_v13 = vld [vmem:[%s4713_s1 + $0xd8] sm:$0xff]  ;;  %v554_v15 = vld [vmem:[%s4713_s1 + $0x80] sm:$0xff] }
  0xda   :  { %827 = vmatpush.msra.mxu2 %v3041_v18  ;;  %1235 = vmatpush.msrb.mxu1 %v2935_v16 }
  0xdb   :  { %2408 = vmatmul.msk.f32.gmra.mxu3 %vm622_vm4, %v541_v10  ;;  %v563_v10 = vld [vmem:[%s4713_s1 + $0xc8] sm:$0xff] }
  0xdc   :  { %1314 = vmatpush.msrb.mxu3 %v2950_v24  ;;  %828 = vmatpush.msra.mxu2 %v3047_v21 }
  0xdd   :  { %1236 = vmatpush.msrb.mxu1 %v2937_v17 }
  0xde   :  { %1315 = vmatpush.msrb.mxu3 %v2962_v31  ;;  %v217_v23 = vpop.permute.xlu1 %216 }
  0xdf   :  { %1237 = vmatpush.msrb.mxu1 %v2977_v39  ;;  %v223_v22 = vpop.permute.xlu0 %222  ;;  %v3057_v25 = vld [vmem:[#allocation2 + $0x50] sm:$0xff]  ;;  %381 = vst.msk [vmem:[#allocation2 + $0x30] sm:$0xff] %vm373_vm0, %v217_v23  ;;  %v304_v30 = vsel %vm300_vm2, %v217_v23, %v219_v59  ;;  %v538_v59 = vld [vmem:[%s4713_s1] sm:$0xff]  ;;  %v2564_v23 = vmov 1.0  }
  0xe0   :  { %1316 = vmatpush.msrb.mxu3 %v2964_v32  ;;  %v305_v28 = vsel %vm300_vm2, %v2987_v44, %v223_v22  ;;  %687 = vmatpush.msra.mxu0 %v3057_v25  ;;  %v3067_v29 = vld [vmem:[#allocation2 + $0x58] sm:$0xff]  ;;  %382 = vst.msk [vmem:[#allocation2 + $0x38] sm:$0xff] %vm375_vm3, %v304_v30 }
  0xe1   :  { %1238 = vmatpush.msrb.mxu1 %v2992_v49  ;;  %384 = vst.msk [vmem:[#allocation2 + $0x48] sm:$0xff] %vm375_vm3, %v305_v28  ;;  %829 = vmatpush.msra.mxu2 %v3067_v29 }
  0xe2   :  { %1317 = vmatpush.msrb.mxu3 %v3010_v0  ;;  %2391 = vmatmul.msk.f32.gmra.mxu1 %vm622_vm4, %v543_v27 }
  0xe3   :  { %1239 = vmatpush.msrb.mxu1 %v2994_v50  ;;  %688 = vmatpush.msra.mxu0 %v3073_v33 }
  0xe4   :  { %1927 = vmatpush.msra.mxu3 %v2859_v42 }
  0xe5   :  { %2409 = vmatmul.msk.f32.gmra.mxu3 %vm622_vm4, %v543_v27  ;;  %1240 = vmatpush.msrb.mxu1 %v3036_v14 }
  0xe6   :  { %1928 = vmatpush.msra.mxu3 %v2895_v58  ;;  %v215_v36 = vpop.permute.xlu1 %214  ;;  %v3089_v40 = vld [vmem:[#allocation2 + $0x30] sm:$0xff] }
  0xe7   :  { %1241 = vmatpush.msrb.mxu1 %v3057_v25  ;;  %v213_v37 = vpop.permute.xlu0 %212  ;;  %689 = vmatpush.msra.mxu0 %v3089_v40  ;;  %v3099_v58 = vld [vmem:[#allocation2 + $0x38] sm:$0xff] }
  0xe8   :  { %1929 = vmatpush.msra.mxu3 %v2908_v1  ;;  %v303_v42 = vsel %vm300_vm2, %v213_v37, %v215_v36  ;;  %379 = vst.msk [vmem:[#allocation2 + $0x20] sm:$0xff] %vm373_vm0, %v213_v37  ;;  %v3093_v43 = vld [vmem:[#allocation2 + $0x48] sm:$0xff]  ;;  %v207_v1 = vpop.permute.xlu2 %206  ;;  %v556_v37 = vld [vmem:[%s4713_s1 + $0x90] sm:$0xff] }
  0xe9   :  { %1242 = vmatpush.msrb.mxu1 %v3073_v33  ;;  %380 = vst.msk [vmem:[#allocation2 + $0x28] sm:$0xff] %vm375_vm3, %v303_v42  ;;  %830 = vmatpush.msra.mxu2 %v3093_v43 }
  0xea   :  { %1930 = vmatpush.msra.mxu3 %v2910_v2  ;;  %2392 = vmatmul.msk.f32.gmra.mxu1 %vm622_vm4, %v545_v38 }
  0xeb   :  { %1243 = vmatpush.msrb.mxu1 %v3089_v40  ;;  %831 = vmatpush.msra.mxu2 %v3099_v58 }
  0xec   :  { %1931 = vmatpush.msra.mxu3 %v2950_v24  ;;  %v3114_v24 = vld [vmem:[#allocation2 + $0x10] sm:$0xff] }
  0xed   :  { %2410 = vmatmul.msk.f32.gmra.mxu3 %vm622_vm4, %v545_v38 }
  0xee   :  { %1932 = vmatpush.msra.mxu3 %v2962_v31  ;;  %v205_v44 = vpop.permute.xlu1 %204 }
  0xef   :  { %v211_v2 = vpop.permute.xlu0 %210  ;;  %v3109_v47 = vld [vmem:[#allocation2 + $0x20] sm:$0xff]  ;;  %374 = vst.msk [vmem:[#allocation2] sm:$0xff] %vm373_vm0, %v205_v44 }
  0xf0   :  { %1933 = vmatpush.msra.mxu3 %v2964_v32  ;;  %v302_v52 = vsel %vm300_vm2, %v3021_v8, %v211_v2  ;;  %690 = vmatpush.msra.mxu0 %v3109_v47  ;;  %v3121_v31 = vld [vmem:[#allocation2 + $0x28] sm:$0xff]  ;;  %v301_v32 = vsel %vm300_vm2, %v205_v44, %v207_v1  ;;  %v550_v8 = vld [vmem:[%s4713_s1 + $0x60] sm:$0xff] }
  0xf1   :  { %1244 = vmatpush.msrb.mxu1 %v3109_v47  ;;  %378 = vst.msk [vmem:[#allocation2 + $0x18] sm:$0xff] %vm375_vm3, %v302_v52  ;;  %832 = vmatpush.msra.mxu2 %v3121_v31 }
  0xf2   :  { %1934 = vmatpush.msra.mxu3 %v3010_v0  ;;  %2393 = vmatmul.msk.f32.gmra.mxu1 %vm622_vm4, %v547_v48  ;;  %376 = vst.msk [vmem:[#allocation2 + $0x8] sm:$0xff] %vm375_vm3, %v301_v32 }
  0xf3   :  { %691 = vmatpush.msra.mxu0 %v3114_v24  ;;  %1245 = vmatpush.msrb.mxu1 %v3114_v24 }
  0xf5   :  { %2411 = vmatmul.msk.f32.gmra.mxu3 %vm622_vm4, %v547_v48 }
  0xf6   :  { %v3135_v61 = vld [vmem:[#allocation2] sm:$0xff] }
  0xf7   :  { %692 = vmatpush.msra.mxu0 %v3135_v61  ;;  %1246 = vmatpush.msrb.mxu1 %v3135_v61 }
  0xf8   :  { %v3142_v63 = vld [vmem:[#allocation2 + $0x18] sm:$0xff]  ;;  %693 = vmatmul.f32.vlgmr.msra.gmra.mxu0 %v538_v59 }
  0xf9   :  { %833 = vmatpush.msra.mxu2 %v3142_v63  ;;  %v3145_v0 = vld [vmem:[#allocation2 + $0x8] sm:$0xff]  ;;  %1373 = vmatpush.msrb.mxu0 %v2885_v53 }
  0xfa   :  { %2394 = vmatmul.msk.f32.gmra.mxu1 %vm622_vm4, %v549_v62 }
  0xfb   :  { %1848 = vmatpush.msra.mxu1 %v2866_v45  ;;  %834 = vmatpush.msra.mxu2 %v3145_v0  ;;  %v551_v45 = vld [vmem:[%s4713_s1 + $0x68] sm:$0xff] }
  0xfc   :  { %1374 = vmatpush.msrb.mxu0 %v2891_v55  ;;  %835 = vmatmul.f32.vlgmr.msra.gmra.mxu2 %v538_v59  ;;  %v569_v59 = vld [vmem:[%s4713_s1 + $0xf8] sm:$0xff] }
  0xfd   :  { %2412 = vmatmul.msk.f32.gmra.mxu3 %vm622_vm4, %v549_v62  ;;  %1849 = vmatpush.msra.mxu1 %v2868_v46  ;;  %v542_v46 = vld [vmem:[%s4713_s1 + $0x20] sm:$0xff] }
  0xfe   :  { %1452 = vmatpush.msrb.mxu2 %v2883_v51  ;;  %1375 = vmatpush.msrb.mxu0 %v2914_v4 }
  0xff   :  { %1850 = vmatpush.msra.mxu1 %v2889_v54  ;;  %v553_v54 = vld [vmem:[%s4713_s1 + $0x78] sm:$0xff] }
 0x100   :  { %1453 = vmatpush.msrb.mxu2 %v2901_v60  ;;  %1376 = vmatpush.msrb.mxu0 %v2928_v11 }
 0x101   :  { %1851 = vmatpush.msra.mxu1 %v2923_v9  ;;  %696 = vmatmul.f32.gmra.mxu0 %v540_v3  ;;  %v544_v9 = vld [vmem:[%s4713_s1 + $0x30] sm:$0xff] }
 0x102   :  { %1454 = vmatpush.msrb.mxu2 %v2919_v5  ;;  %2395 = vmatmul.msk.f32.gmra.mxu1 %vm622_vm4, %v551_v45 }
 0x103   :  { %1377 = vmatpush.msrb.mxu0 %v2946_v20  ;;  %1852 = vmatpush.msra.mxu1 %v2935_v16  ;;  %v555_v16 = vld [vmem:[%s4713_s1 + $0x88] sm:$0xff] }
 0x104   :  { %1455 = vmatpush.msrb.mxu2 %v2941_v19 }
 0x105   :  { %2413 = vmatmul.msk.f32.gmra.mxu3 %vm622_vm4, %v551_v45  ;;  %1378 = vmatpush.msrb.mxu0 %v2968_v34  ;;  %v560_v45 = vld [vmem:[%s4713_s1 + $0xb0] sm:$0xff] }
 0x106   :  { %1853 = vmatpush.msra.mxu1 %v2937_v17  ;;  %838 = vmatmul.f32.gmra.mxu2 %v540_v3  ;;  %v557_v17 = vld [vmem:[%s4713_s1 + $0x98] sm:$0xff]  ;;  %v571_v3 = vld [vmem:[%s4713_s1 + $0x108] sm:$0xff] }
 0x107   :  { %1456 = vmatpush.msrb.mxu2 %v2955_v26  ;;  %1379 = vmatpush.msrb.mxu0 %v2982_v41 }
 0x108   :  { %1854 = vmatpush.msra.mxu1 %v2977_v39  ;;  %v546_v39 = vld [vmem:[%s4713_s1 + $0x40] sm:$0xff] }
 0x109   :  { %1457 = vmatpush.msrb.mxu2 %v2973_v35  ;;  %1380 = vmatpush.msrb.mxu0 %v3003_v57 }
 0x10a   :  { %1855 = vmatpush.msra.mxu1 %v2992_v49  ;;  %699 = vmatmul.f32.gmra.mxu0 %v542_v46  ;;  %v559_v49 = vld [vmem:[%s4713_s1 + $0xa8] sm:$0xff] }
 0x10b   :  { %1458 = vmatpush.msrb.mxu2 %v2998_v56  ;;  %2396 = vmatmul.msk.f32.gmra.mxu1 %vm622_vm4, %v553_v54 }
 0x10c   :  { %1381 = vmatpush.msrb.mxu0 %v3041_v18  ;;  %1856 = vmatpush.msra.mxu1 %v2994_v50  ;;  %v548_v50 = vld [vmem:[%s4713_s1 + $0x50] sm:$0xff] }
 0x10d   :  { %2414 = vmatmul.msk.f32.gmra.mxu3 %vm622_vm4, %v553_v54  ;;  %1459 = vmatpush.msrb.mxu2 %v3015_v6 }
 0x10e   :  { %1382 = vmatpush.msrb.mxu0 %v3047_v21  ;;  %1857 = vmatpush.msra.mxu1 %v3036_v14  ;;  %v423_v14 = vlaneseq }
 0x10f   :  { %2069 = vmatpush.msra.mxu2 %v2883_v51 }
 0x110   :  { %841 = vmatmul.f32.gmra.mxu2 %v542_v46  ;;  %1383 = vmatpush.msrb.mxu0 %v3067_v29  ;;  %v3276_v22 = vand.u32 127, %v423_v14  ;;  %v3362_v14 = vld [vmem:[%s4713_s1 + $0x128] sm:$0xff] }
 0x111   :  { %1858 = vmatpush.msra.mxu1 %v3057_v25  ;;  %2070 = vmatpush.msra.mxu2 %v2901_v60 }
 0x112   :  { %1384 = vmatpush.msrb.mxu0 %v3093_v43  ;;  %vm430_vm5 = vcmp.eq.s32.totalorder %v3276_v22, 13  ;;  %vm438_vm6 = vcmp.eq.s32.totalorder %v3276_v22, 27  ;;  %v3284_v27 = vadd.s32 128, %v3276_v22  ;;  %vm446_vm7 = vcmp.eq.s32.totalorder %v3276_v22, 41 }
 0x113   :  { %1859 = vmatpush.msra.mxu1 %v3073_v33  ;;  %2071 = vmatpush.msra.mxu2 %v2919_v5  ;;  %v432_v25 = vsel %vm430_vm5, 0.0, %v2564_v23  ;;  %vm454_vm8 = vcmp.eq.s32.totalorder %v3276_v22, 55  ;;  %v567_v33 = vld [vmem:[%s4713_s1 + $0xe8] sm:$0xff]  ;;  %vm462_vm9 = vcmp.eq.s32.totalorder %v3276_v22, 69  ;;  %vm470_vm11 = vcmp.eq.s32.totalorder %v3276_v22, 83 }
 0x114   :  { %702 = vmatmul.f32.gmra.mxu0 %v544_v9  ;;  %2397 = vmatmul.msk.f32.gmra.mxu1 %vm622_vm4, %v555_v16  ;;  %v440_v28 = vsel %vm438_vm6, 0.0, %v432_v25  ;;  %vm503_vm10 = vcmp.eq.s32.totalorder %v3284_v27, 139  ;;  %vm511_vm12 = vcmp.eq.s32.totalorder %v3284_v27, 153  ;;  %vm478_vm13 = vcmp.eq.s32.totalorder %v3276_v22, 97 }
 0x115   :  { %1385 = vmatpush.msrb.mxu0 %v3099_v58  ;;  %1860 = vmatpush.msra.mxu1 %v3089_v40  ;;  %v448_v30 = vsel %vm446_vm7, 0.0, %v440_v28  ;;  %v505_v40 = vsel %vm503_vm10, 0.0, %v2564_v23  ;;  %vm519_vm14 = vcmp.eq.s32.totalorder %v3284_v27, 167  ;;  %vm486_vm15 = vcmp.eq.s32.totalorder %v3276_v22, 111 }
 0x116   :  { %2072 = vmatpush.msra.mxu2 %v2941_v19  ;;  %2415 = vmatmul.msk.f32.gmra.mxu3 %vm622_vm4, %v555_v16  ;;  %v456_v36 = vsel %vm454_vm8, 0.0, %v448_v30  ;;  %v513_v1 = vsel %vm511_vm12, 0.0, %v505_v40  ;;  %vm527_vm0 = vcmp.eq.s32.totalorder %v3284_v27, 181  ;;  %vm494_vm2 = vcmp.eq.s32.totalorder %v3276_v22, 125 }
 0x117   :  { %1386 = vmatpush.msrb.mxu0 %v3121_v31  ;;  %1861 = vmatpush.msra.mxu1 %v3109_v47  ;;  %v464_v38 = vsel %vm462_vm9, 0.0, %v456_v36  ;;  %v521_v44 = vsel %vm519_vm14, 0.0, %v513_v1  ;;  %vm535_vm3 = vcmp.eq.s32.totalorder %v3284_v27, 195  ;;  %vm426_vm5 = vcmp.eq.s32.totalorder %v3276_v22, 0 }
 0x118   :  { %2073 = vmatpush.msra.mxu2 %v2955_v26  ;;  %v472_v42 = vsel %vm470_vm11, 0.0, %v464_v38  ;;  %v529_v48 = vsel %vm527_vm0, 0.0, %v521_v44  ;;  %v428_v54 = vsel %vm426_vm5, 0.0, %v2564_v23  ;;  %vm434_vm6 = vcmp.eq.s32.totalorder %v3276_v22, 14 }
 0x119   :  { %844 = vmatmul.f32.gmra.mxu2 %v544_v9  ;;  %1387 = vmatpush.msrb.mxu0 %v3142_v63  ;;  %v480_v2 = vsel %vm478_vm13, 0.0, %v472_v42  ;;  %v537_v52 = vsel %vm535_vm3, 0.0, %v529_v48  ;;  %v436_v16 = vsel %vm434_vm6, 0.0, %v428_v54  ;;  %vm442_vm7 = vcmp.eq.s32.totalorder %v3276_v22, 28  ;;  %v3483_v42 = vld [vmem:[%s4713_s1 + $0x168] sm:$0xff]  ;;  %v3537_v54 = vld [vmem:[%s4713_s1 + $0x180] sm:$0xff] }
 0x11a   :  { %1862 = vmatpush.msra.mxu1 %v3114_v24  ;;  %2074 = vmatpush.msra.mxu2 %v2973_v35  ;;  %v488_v47 = vsel %vm486_vm15, 0.0, %v480_v2  ;;  %vm450_vm8 = vcmp.eq.s32.totalorder %v3276_v22, 42  ;;  %vm458_vm9 = vcmp.eq.s32.totalorder %v3276_v22, 56  ;;  %vm466_vm10 = vcmp.eq.s32.totalorder %v3276_v22, 70 }
 0x11b   :  { %1388 = vmatpush.msrb.mxu0 %v3145_v0  ;;  %v496_v24 = vsel %vm494_vm2, 0.0, %v488_v47  ;;  %vm507_vm11 = vcmp.eq.s32.totalorder %v3284_v27, 140  ;;  %vm474_vm12 = vcmp.eq.s32.totalorder %v3276_v22, 84  ;;  %vm515_vm13 = vcmp.eq.s32.totalorder %v3284_v27, 154  ;;  %v3505_v47 = vld [vmem:[%s4713_s1 + $0x178] sm:$0xff] }
 0x11c   :  { %1863 = vmatpush.msra.mxu1 %v3135_v61  ;;  %2075 = vmatpush.msra.mxu2 %v2998_v56  ;;  %v3307_v32 = vpack.i.bf16 %v537_v52, %v496_v24  ;;  %v558_v61 = vld [vmem:[%s4713_s1 + $0xa0] sm:$0xff]  ;;  %v509_v25 = vsel %vm507_vm11, 0.0, %v2564_v23  ;;  %vm482_vm14 = vcmp.eq.s32.totalorder %v3276_v22, 98  ;;  %vm523_vm15 = vcmp.eq.s32.totalorder %v3284_v27, 168  ;;  %v3385_v23 = vld [vmem:[%s4713_s1 + $0x130] sm:$0xff] }
 0x11d   :  { %1990 = vmatpush.msra.mxu0 %v2885_v53  ;;  %2398 = vmatmul.msk.f32.gmra.mxu1 %vm622_vm4, %v557_v17  ;;  %vm490_vm0 = vcmp.eq.s32.totalorder %v3276_v22, 112  ;;  %vm498_vm2 = vcmp.eq.s32.totalorder %v3276_v22, 126  ;;  %vm531_vm3 = vcmp.eq.s32.totalorder %v3284_v27, 182  ;;  %v3513_v24 = vld [vmem:[%s4713_s1 + $0x170] sm:$0xff]  ;;  %vm1058_vm5 = vcmask 15360  }
 0x11e   :  { %705 = vmatmul.f32.gmra.mxu0 %v546_v39  ;;  %2076 = vmatpush.msra.mxu2 %v3015_v6  ;;  %vm1521_vm6 = vcmask 113664   ;;  %vm2136_vm11 = vcmask 228352  }
 0x11f   :  { %2416 = vmatmul.msk.f32.gmra.mxu3 %vm622_vm4, %v557_v17  ;;  %1991 = vmatpush.msra.mxu0 %v2891_v55  ;;  %v573_v17 = vld [vmem:[%s4713_s1 + $0x118] sm:$0xff] }
 0x120   :  { %2538 = vrot.lane.b32.xlu0 %v3307_v32, %s2565_s19  ;;  %2548 = vrot.lane.b32.xlu2 %v3307_v32, %s2568_s3  ;;  %s2576_s19 = smov 99  }
 0x121   :  { %847 = vmatmul.f32.gmra.mxu2 %v546_v39  ;;  %1992 = vmatpush.msra.mxu0 %v2914_v4  ;;  %v562_v39 = vld [vmem:[%s4713_s1 + $0xc0] sm:$0xff] }
 0x123   :  { %1993 = vmatpush.msra.mxu0 %v2928_v11 }
 0x125   :  { %1994 = vmatpush.msra.mxu0 %v2946_v20  ;;  %2399 = vmatmul.msk.f32.gmra.mxu1 %vm622_vm4, %v559_v49 }
 0x126   :  { %708 = vmatmul.f32.gmra.mxu0 %v548_v50 }
 0x127   :  { %2417 = vmatmul.msk.f32.gmra.mxu3 %vm622_vm4, %v559_v49  ;;  %1995 = vmatpush.msra.mxu0 %v2968_v34  ;;  %v444_v49 = vsel %vm442_vm7, 0.0, %v436_v16  ;;  %vm1021_vm7 = vcmask 1039360  }
 0x128   :  { %2558 = vrot.lane.b32.xlu2 %v3307_v32, %s2569_s8 }
 0x129   :  { %850 = vmatmul.f32.gmra.mxu2 %v548_v50  ;;  %1996 = vmatpush.msra.mxu0 %v2982_v41 }
 0x12b   :  { %1997 = vmatpush.msra.mxu0 %v3003_v57 }
 0x12d   :  { %1998 = vmatpush.msra.mxu0 %v3041_v18  ;;  %2400 = vmatmul.msk.f32.gmra.mxu1 %vm622_vm4, %v561_v7 }
 0x12e   :  { %711 = vmatmul.f32.gmra.mxu0 %v550_v8 }
 0x12f   :  { %2418 = vmatmul.msk.f32.gmra.mxu3 %vm622_vm4, %v561_v7  ;;  %1999 = vmatpush.msra.mxu0 %v3047_v21  ;;  %v452_v7 = vsel %vm450_vm8, 0.0, %v444_v49  ;;  %vm1110_vm8 = vcmask 1031168  }
 0x131   :  { %853 = vmatmul.f32.gmra.mxu2 %v550_v8  ;;  %2000 = vmatpush.msra.mxu0 %v3067_v29 }
 0x133   :  { %2001 = vmatpush.msra.mxu0 %v3093_v43 }
 0x135   :  { %2002 = vmatpush.msra.mxu0 %v3099_v58  ;;  %2401 = vmatmul.msk.f32.gmra.mxu1 %vm622_vm4, %v563_v10 }
 0x136   :  { %714 = vmatmul.f32.gmra.mxu0 %v552_v12 }
 0x137   :  { %2419 = vmatmul.msk.f32.gmra.mxu3 %vm622_vm4, %v563_v10  ;;  %2003 = vmatpush.msra.mxu0 %v3121_v31  ;;  %v460_v10 = vsel %vm458_vm9, 0.0, %v452_v7  ;;  %vm1675_vm9 = vcmask 130048  }
 0x139   :  { %856 = vmatmul.f32.gmra.mxu2 %v552_v12  ;;  %2004 = vmatpush.msra.mxu0 %v3142_v63  ;;  %v3354_v12 = vld [vmem:[%s4713_s1 + $0x120] sm:$0xff] }
 0x13b   :  { %2005 = vmatpush.msra.mxu0 %v3145_v0 }
 0x13d   :  { %2402 = vmatmul.msk.f32.gmra.mxu1 %vm622_vm4, %v565_v13 }
 0x13e   :  { %717 = vmatmul.f32.gmra.mxu0 %v554_v15 }
 0x13f   :  { %2420 = vmatmul.msk.f32.gmra.mxu3 %vm622_vm4, %v565_v13  ;;  %v564_v13 = vld [vmem:[%s4713_s1 + $0xd0] sm:$0xff] }
 0x141   :  { %859 = vmatmul.f32.gmra.mxu2 %v554_v15  ;;  %v468_v15 = vsel %vm466_vm10, 0.0, %v460_v10  ;;  %v3563_v10 = vld [vmem:[%s4713_s1 + $0x190] sm:$0xff]  ;;  %vm1573_vm10 = vcmask 932864  }
 0x145   :  { %2403 = vmatmul.msk.f32.gmra.mxu1 %vm622_vm4, %v567_v33 }
 0x146   :  { %720 = vmatmul.f32.gmra.mxu0 %v556_v37 }
 0x147   :  { %2421 = vmatmul.msk.f32.gmra.mxu3 %vm622_vm4, %v567_v33  ;;  %v476_v33 = vsel %vm474_vm12, 0.0, %v468_v15  ;;  %vm1727_vm12 = vcmask 916480  }
 0x148   :  { %v484_v36 = vsel %vm482_vm14, 0.0, %v476_v33  ;;  %vm2188_vm14 = vcmask 818176  }
 0x149   :  { %862 = vmatmul.f32.gmra.mxu2 %v556_v37 }
 0x14d   :  { %2404 = vmatmul.msk.f32.gmra.mxu1 %vm622_vm4, %v569_v59 }
 0x14e   :  { %723 = vmatmul.f32.gmra.mxu0 %v558_v61  ;;  %v3317_v62 = vpop.f32.mrf.mxu1 }
 0x14f   :  { %2422 = vmatmul.msk.f32.gmra.mxu3 %vm622_vm4, %v569_v59 }
 0x151   :  { %865 = vmatmul.f32.gmra.mxu2 %v558_v61 }
 0x155   :  { %2405 = vmatmul.msk.f32.gmra.mxu1 %vm622_vm4, %v571_v3  ;;  %v3328_v46 = vpop.f32.mrf.mxu3 }
 0x156   :  { %726 = vmatmul.f32.gmra.mxu0 %v560_v45  ;;  %v3332_v9 = vpop.f32.mrf.mxu1 }
 0x157   :  { %2423 = vmatmul.msk.f32.gmra.mxu3 %vm622_vm4, %v571_v3 }
 0x159   :  { %868 = vmatmul.f32.gmra.mxu2 %v560_v45 }
 0x15d   :  { %2406 = vmatmul.msk.f32.gmra.mxu1 %vm622_vm4, %v573_v17 }
 0x15e   :  { %729 = vmatmul.f32.gmra.mxu0 %v562_v39  ;;  %v3344_v50 = vpop.f32.mrf.mxu3 }
 0x15f   :  { %2424 = vmatmul.msk.f32.gmra.mxu3 %vm622_vm4, %v573_v17  ;;  %v3348_v8 = vpop.f32.mrf.mxu1 }
 0x161   :  { %871 = vmatmul.f32.gmra.mxu2 %v562_v39 }
 0x165   :  { %1247 = vmatmul.f32.vlgmr.msrb.gmra.mxu1 %v3354_v12 }
 0x166   :  { %732 = vmatmul.f32.gmra.mxu0 %v564_v13  ;;  %2497 = vmatpush.msrb.mxu1 %v2885_v53  ;;  %v517_v53 = vsel %vm515_vm13, 0.0, %v509_v25  ;;  %vm2290_vm13 = vcmask 244736  }
 0x167   :  { %2425 = vmatmul.msk.f32.vlgmr.msrb.gmra.mxu3 %vm622_vm4, %v3362_v14  ;;  %v3374_v30 = vpop.f32.mrf.mxu1 }
 0x168   :  { %v3372_v28 = vpop.f32.mrf.mxu3  ;;  %2513 = vmatpush.msrb.mxu3 %v2883_v51  ;;  %2498 = vmatpush.msrb.mxu1 %v2891_v55  ;;  %v566_v51 = vld [vmem:[%s4713_s1 + $0xe0] sm:$0xff]  ;;  %v3396_v55 = vld [vmem:[%s4713_s1 + $0x138] sm:$0xff] }
 0x169   :  { %874 = vmatmul.f32.gmra.mxu2 %v564_v13 }
 0x16a   :  { %2514 = vmatpush.msrb.mxu3 %v2901_v60  ;;  %2499 = vmatpush.msrb.mxu1 %v2914_v4  ;;  %v525_v60 = vsel %vm523_vm15, 0.0, %v517_v53  ;;  %v492_v4 = vsel %vm490_vm0, 0.0, %v484_v36  ;;  %v3589_v53 = vld [vmem:[%s4713_s1 + $0x1a0] sm:$0xff]  ;;  %vm2373_vm15 = vcmask 556032   ;;  %vm2255_vm0 = vcmask 809984  }
 0x16b   :  { %v3410_v37 = vsel %vm498_vm2, 0.0, %v492_v4  ;;  %v3412_v38 = vsel %vm531_vm3, 0.0, %v525_v60 }
 0x16c   :  { %2515 = vmatpush.msrb.mxu3 %v2919_v5  ;;  %2500 = vmatpush.msrb.mxu1 %v2928_v11 }
 0x16d   :  { %1250 = vmatmul.f32.gmra.mxu1 %v3385_v23 }
 0x16e   :  { %2516 = vmatpush.msrb.mxu3 %v2941_v19  ;;  %735 = vmatmul.f32.gmra.mxu0 %v566_v51  ;;  %v2542_v19 = vpack.i.bf16 %v3412_v38, %v3410_v37 }
 0x16f   :  { %2501 = vmatpush.msrb.mxu1 %v2946_v20  ;;  %2426 = vmatmul.msk.f32.gmra.mxu3 %vm622_vm4, %v3396_v55  ;;  %v3407_v11 = vpop.f32.mrf.mxu1  ;;  %v568_v20 = vld [vmem:[%s4713_s1 + $0xf0] sm:$0xff] }
 0x170   :  { %v3405_v5 = vpop.f32.mrf.mxu3  ;;  %2517 = vmatpush.msrb.mxu3 %v2955_v26  ;;  %2543 = vrot.lane.b32.xlu1 %v2542_v19, %s2566_s14  ;;  %v3426_v26 = vld [vmem:[%s4713_s1 + $0x148] sm:$0xff] }
 0x171   :  { %2502 = vmatpush.msrb.mxu1 %v2968_v34  ;;  %877 = vmatmul.f32.gmra.mxu2 %v566_v51  ;;  %v3432_v34 = vld [vmem:[%s4713_s1 + $0x140] sm:$0xff] }
 0x172   :  { %2518 = vmatpush.msrb.mxu3 %v2973_v35  ;;  %2553 = vrot.lane.b32.xlu0 %v2542_v19, %s2567_s30 }
 0x173   :  { %2503 = vmatpush.msrb.mxu1 %v2982_v41 }
 0x174   :  { %2519 = vmatpush.msrb.mxu3 %v2998_v56 }
 0x175   :  { %2504 = vmatpush.msrb.mxu1 %v3003_v57  ;;  %v3435_v35 = vpop.f32.mrf.mxu0  ;;  %v570_v57 = vld [vmem:[%s4713_s1 + $0x100] sm:$0xff] }
 0x176   :  { %2520 = vmatpush.msrb.mxu3 %v3015_v6  ;;  %738 = vmatmul.f32.gmra.mxu0 %v568_v20  ;;  %v3453_v6 = vld [vmem:[%s4713_s1 + $0x158] sm:$0xff] }
 0x177   :  { %2505 = vmatpush.msrb.mxu1 %v3041_v18  ;;  %2427 = vmatmul.msk.f32.gmra.mxu3 %vm622_vm4, %v3426_v26  ;;  %v3442_v56 = vpop.f32.mrf.mxu1  ;;  %v3459_v18 = vld [vmem:[%s4713_s1 + $0x150] sm:$0xff] }
 0x178   :  { %v3440_v41 = vpop.f32.mrf.mxu3  ;;  %1253 = vmatmul.f32.gmra.mxu1 %v3432_v34 }
 0x179   :  { %2506 = vmatpush.msrb.mxu1 %v3047_v21  ;;  %880 = vmatmul.f32.gmra.mxu2 %v568_v20  ;;  %v3614_v20 = vld [vmem:[%s4713_s1 + $0x1b0] sm:$0xff] }
 0x17b   :  { %2507 = vmatpush.msrb.mxu1 %v3067_v29 }
 0x17d   :  { %2508 = vmatpush.msrb.mxu1 %v3093_v43 }
 0x17e   :  { %741 = vmatmul.f32.gmra.mxu0 %v570_v57  ;;  %v3461_v21 = vpop.f32.mrf.mxu0 }
 0x17f   :  { %2509 = vmatpush.msrb.mxu1 %v3099_v58  ;;  %2428 = vmatmul.msk.f32.gmra.mxu3 %vm622_vm4, %v3453_v6  ;;  %v3468_v22 = vpop.f32.mrf.mxu1  ;;  %v836_v27 = vpop.f32.mrf.mxu2  ;;  %v572_v58 = vld [vmem:[%s4713_s1 + $0x110] sm:$0xff] }
 0x180   :  { %v3466_v29 = vpop.f32.mrf.mxu3  ;;  %1256 = vmatmul.f32.gmra.mxu1 %v3459_v18  ;;  %v908_v43 = vadd.f32 %v3328_v46, %v836_v27  ;;  %v3532_v46 = vld [vmem:[%s4713_s1 + $0x188] sm:$0xff] }
 0x181   :  { %2510 = vmatpush.msrb.mxu1 %v3121_v31  ;;  %883 = vmatmul.f32.gmra.mxu2 %v570_v57  ;;  %v3489_v31 = vld [vmem:[%s4713_s1 + $0x160] sm:$0xff] }
 0x182   :  { %v3478_v40 = vmul.f32 %v908_v43, %v3412_v38 }
 0x183   :  { %2511 = vmatpush.msrb.mxu1 %v3142_v63 }
 0x185   :  { %2512 = vmatpush.msrb.mxu1 %v3145_v0 }
 0x186   :  { %744 = vmatmul.f32.gmra.mxu0 %v572_v58 }
 0x187   :  { %2429 = vmatmul.msk.f32.gmra.mxu3 %vm622_vm4, %v3483_v42  ;;  %v3495_v1 = vpop.f32.mrf.mxu0 }
 0x188   :  { %v3493_v63 = vpop.f32.mrf.mxu3  ;;  %1259 = vmatmul.f32.gmra.mxu1 %v3489_v31  ;;  %v3498_v2 = vpop.f32.mrf.mxu1 }
 0x189   :  { %886 = vmatmul.f32.gmra.mxu2 %v572_v58  ;;  %v839_v0 = vpop.f32.mrf.mxu2 }
 0x18a   :  { %v911_v44 = vadd.f32 %v3344_v50, %v839_v0  ;;  %v3557_v50 = vld [vmem:[%s4713_s1 + $0x198] sm:$0xff]  ;;  %v3664_v0 = vld [vmem:[%s4713_s1 + $0x1d0] sm:$0xff] }
 0x18c   :  { %v3508_v48 = vmul.f32 %v911_v44, %v3412_v38 }
 0x18e   :  { %1389 = vmatmul.f32.vlgmr.msrb.gmra.mxu0 %v3354_v12 }
 0x18f   :  { %2430 = vmatmul.msk.f32.gmra.mxu3 %vm622_vm4, %v3505_v47 }
 0x190   :  { %v3518_v52 = vpop.f32.mrf.mxu3  ;;  %1262 = vmatmul.f32.gmra.mxu1 %v3513_v24 }
 0x191   :  { %2443 = vmatmul.msk.f32.vlgmr.msrb.gmra.mxu2 %vm622_vm4, %v3362_v14  ;;  %v3524_v59 = vpop.f32.mrf.mxu0  ;;  %v3526_v61 = vpop.f32.mrf.mxu1 }
 0x193   :  { %v842_v3 = vpop.f32.mrf.mxu2 }
 0x194   :  { %v914_v45 = vadd.f32 %v3372_v28, %v842_v3  ;;  %v3583_v28 = vld [vmem:[%s4713_s1 + $0x1a8] sm:$0xff] }
 0x195   :  { %v3682_v3 = vld [vmem:[%s4713_s1 + $0x1e8] sm:$0xff] }
 0x196   :  { %1392 = vmatmul.f32.gmra.mxu0 %v3385_v23  ;;  %v3541_v32 = vmul.f32 %v914_v45, %v3412_v38 }
 0x197   :  { %2431 = vmatmul.msk.f32.gmra.mxu3 %vm622_vm4, %v3532_v46 }
 0x198   :  { %1265 = vmatmul.f32.gmra.mxu1 %v3537_v54 }
 0x199   :  { %2444 = vmatmul.msk.f32.gmra.mxu2 %vm622_vm4, %v3396_v55  ;;  %v3548_v16 = vpop.f32.mrf.mxu3 }
 0x19a   :  { %v3550_v17 = vpop.f32.mrf.mxu1 }
 0x19b   :  { %v3552_v39 = vpop.f32.mrf.mxu0 }
 0x19c   :  { %v845_v49 = vpop.f32.mrf.mxu2 }
 0x19d   :  { %v917_v7 = vadd.f32 %v3405_v5, %v845_v49  ;;  %v3608_v5 = vld [vmem:[%s4713_s1 + $0x1b8] sm:$0xff] }
 0x19e   :  { %1395 = vmatmul.f32.gmra.mxu0 %v3432_v34 }
 0x19f   :  { %2432 = vmatmul.msk.f32.gmra.mxu3 %vm622_vm4, %v3557_v50  ;;  %v3569_v12 = vmul.f32 %v917_v7, %v3412_v38 }
 0x1a0   :  { %1268 = vmatmul.f32.gmra.mxu1 %v3563_v10 }
 0x1a1   :  { %2445 = vmatmul.msk.f32.gmra.mxu2 %vm622_vm4, %v3426_v26 }
 0x1a2   :  { %v3574_v13 = vpop.f32.mrf.mxu3  ;;  %v3576_v14 = vpop.f32.mrf.mxu1 }
 0x1a3   :  { %v3578_v15 = vpop.f32.mrf.mxu0 }
 0x1a4   :  { %v848_v25 = vpop.f32.mrf.mxu2 }
 0x1a5   :  { %v920_v33 = vadd.f32 %v3440_v41, %v848_v25 }
 0x1a6   :  { %1398 = vmatmul.f32.gmra.mxu0 %v3459_v18 }
 0x1a7   :  { %2433 = vmatmul.msk.f32.gmra.mxu3 %vm622_vm4, %v3583_v28  ;;  %v3595_v23 = vmul.f32 %v920_v33, %v3412_v38  ;;  %v3712_v33 = vld [vmem:[%s4713_s1 + $0x1f0] sm:$0xff] }
 0x1a8   :  { %1271 = vmatmul.f32.gmra.mxu1 %v3589_v53 }
 0x1a9   :  { %2446 = vmatmul.msk.f32.gmra.mxu2 %vm622_vm4, %v3453_v6 }
 0x1aa   :  { %v3600_v36 = vpop.f32.mrf.mxu3  ;;  %v3602_v51 = vpop.f32.mrf.mxu1 }
 0x1ab   :  { %v712_v55 = vpop.f32.mrf.mxu0 }
 0x1ac   :  { %v784_v60 = vadd.f32 %v3468_v22, %v712_v55  ;;  %v851_v4 = vpop.f32.mrf.mxu2  ;;  %v3640_v22 = vld [vmem:[%s4713_s1 + $0x1c0] sm:$0xff] }
 0x1ad   :  { %v923_v19 = vadd.f32 %v3466_v29, %v851_v4  ;;  %v3634_v29 = vld [vmem:[%s4713_s1 + $0x1c8] sm:$0xff] }
 0x1ae   :  { %997 = vrot.lane.b32.xlu0 %v784_v60, %s2570_s15  ;;  %1401 = vmatmul.f32.gmra.mxu0 %v3489_v31  ;;  %v3730_v60 = vld [vmem:[%s4713_s1 + $0x208] sm:$0xff] }
 0x1af   :  { %2434 = vmatmul.msk.f32.gmra.mxu3 %vm622_vm4, %v3608_v5  ;;  %v3621_v26 = vmul.f32 %v923_v19, %v3412_v38  ;;  %v3736_v19 = vld [vmem:[%s4713_s1 + $0x200] sm:$0xff] }
 0x1b0   :  { %1274 = vmatmul.f32.gmra.mxu1 %v3614_v20 }
 0x1b1   :  { %2447 = vmatmul.msk.f32.gmra.mxu2 %vm622_vm4, %v3483_v42 }
 0x1b2   :  { %v3626_v34 = vpop.f32.mrf.mxu3  ;;  %v3628_v41 = vpop.f32.mrf.mxu1 }
 0x1b3   :  { %v715_v57 = vpop.f32.mrf.mxu0 }
 0x1b4   :  { %v787_v6 = vadd.f32 %v3498_v2, %v715_v57  ;;  %v854_v18 = vpop.f32.mrf.mxu2 }
 0x1b5   :  { %v926_v38 = vadd.f32 %v3493_v63, %v854_v18  ;;  %v3658_v63 = vld [vmem:[%s4713_s1 + $0x1d8] sm:$0xff] }
 0x1b6   :  { %1001 = vrot.lane.b32.xlu2 %v787_v6, %s2570_s15  ;;  %1404 = vmatmul.f32.gmra.mxu0 %v3513_v24 }
 0x1b7   :  { %2435 = vmatmul.msk.f32.gmra.mxu3 %vm622_vm4, %v3634_v29  ;;  %999 = vrot.lane.b32.xlu1 %v926_v38, %s2570_s15  ;;  %v3756_v38 = vld [vmem:[%s4713_s1 + $0x218] sm:$0xff] }
 0x1b8   :  { %1277 = vmatmul.f32.gmra.mxu1 %v3640_v22 }
 0x1b9   :  { %2448 = vmatmul.msk.f32.gmra.mxu2 %vm622_vm4, %v3505_v47 }
 0x1ba   :  { %v3650_v27 = vpop.f32.mrf.mxu3  ;;  %v3652_v43 = vpop.f32.mrf.mxu1 }
 0x1bb   :  { %v718_v58 = vpop.f32.mrf.mxu0 }
 0x1bc   :  { %v790_v42 = vadd.f32 %v3526_v61, %v718_v58  ;;  %v857_v31 = vpop.f32.mrf.mxu2 }
 0x1bd   :  { %v929_v2 = vadd.f32 %v3518_v52, %v857_v31 }
 0x1be   :  { %1407 = vmatmul.f32.gmra.mxu0 %v3537_v54  ;;  %v3688_v54 = vld [vmem:[%s4713_s1 + $0x1e0] sm:$0xff] }
 0x1bf   :  { %2436 = vmatmul.msk.f32.gmra.mxu3 %vm622_vm4, %v3658_v63  ;;  %1005 = vrot.lane.b32.xlu1 %v790_v42, %s2570_s15 }
 0x1c0   :  { %1003 = vrot.lane.b32.xlu0 %v929_v2, %s2570_s15  ;;  %1280 = vmatmul.f32.gmra.mxu1 %v3664_v0 }
 0x1c1   :  { %2449 = vmatmul.msk.f32.gmra.mxu2 %vm622_vm4, %v3532_v46 }
 0x1c2   :  { %v3674_v44 = vpop.f32.mrf.mxu3  ;;  %v3676_v47 = vpop.f32.mrf.mxu1 }
 0x1c3   :  { %v721_v24 = vpop.f32.mrf.mxu0 }
 0x1c4   :  { %v793_v52 = vadd.f32 %v3550_v17, %v721_v24  ;;  %v860_v61 = vpop.f32.mrf.mxu2 }
 0x1c5   :  { %v932_v45 = vadd.f32 %v3548_v16, %v860_v61  ;;  %v3784_v61 = vld [vmem:[%s4713_s1 + $0x228] sm:$0xff] }
 0x1c6   :  { %1410 = vmatmul.f32.gmra.mxu0 %v3563_v10  ;;  %v3706_v10 = vld [vmem:[%s4713_s1 + $0x1f8] sm:$0xff] }
 0x1c7   :  { %2437 = vmatmul.msk.f32.gmra.mxu3 %vm622_vm4, %v3682_v3  ;;  %1007 = vrot.lane.b32.xlu2 %v932_v45, %s2570_s15 }
 0x1c8   :  { %1009 = vrot.lane.b32.xlu0 %v793_v52, %s2570_s15  ;;  %1283 = vmatmul.f32.gmra.mxu1 %v3688_v54 }
 0x1c9   :  { %2450 = vmatmul.msk.f32.gmra.mxu2 %vm622_vm4, %v3557_v50 }
 0x1ca   :  { %v3698_v46 = vpop.f32.mrf.mxu3  ;;  %v3700_v16 = vpop.f32.mrf.mxu1 }
 0x1cb   :  { %v724_v17 = vpop.f32.mrf.mxu0 }
 0x1cc   :  { %v796_v49 = vadd.f32 %v3576_v14, %v724_v17  ;;  %v863_v7 = vpop.f32.mrf.mxu2 }
 0x1cd   :  { %v935_v25 = vadd.f32 %v3574_v13, %v863_v7 }
 0x1ce   :  { %1413 = vmatmul.f32.gmra.mxu0 %v3589_v53 }
 0x1cf   :  { %2438 = vmatmul.msk.f32.gmra.mxu3 %vm622_vm4, %v3706_v10  ;;  %1013 = vrot.lane.b32.xlu2 %v796_v49, %s2570_s15 }
 0x1d0   :  { %1011 = vrot.lane.b32.xlu1 %v935_v25, %s2570_s15  ;;  %1286 = vmatmul.f32.gmra.mxu1 %v3712_v33 }
 0x1d1   :  { %2451 = vmatmul.msk.f32.gmra.mxu2 %vm622_vm4, %v3583_v28  ;;  %v2539_v28 = vpop.permute.xlu0 %2538 }
 0x1d2   :  { %v3722_v50 = vpop.f32.mrf.mxu3  ;;  %v3724_v13 = vpop.f32.mrf.mxu1 }
 0x1d3   :  { %v727_v14 = vpop.f32.mrf.mxu0 }
 0x1d4   :  { %v799_v55 = vadd.f32 %v3602_v51, %v727_v14  ;;  %v866_v53 = vpop.f32.mrf.mxu2  ;;  %v3748_v51 = vunpack.i.l.bf16 %v2539_v28  ;;  %v3808_v14 = vld [vmem:[%s4713_s1 + $0x238] sm:$0xff] }
 0x1d5   :  { %v938_v4 = vadd.f32 %v3600_v36, %v866_v53 }
 0x1d6   :  { %1416 = vmatmul.f32.gmra.mxu0 %v3614_v20 }
 0x1d7   :  { %2439 = vmatmul.msk.f32.gmra.mxu3 %vm622_vm4, %v3730_v60  ;;  %1015 = vrot.lane.b32.xlu0 %v938_v4, %s2570_s15 }
 0x1d8   :  { %1017 = vrot.lane.b32.xlu1 %v799_v55, %s2570_s15  ;;  %1289 = vmatmul.f32.gmra.mxu1 %v3736_v19 }
 0x1d9   :  { %2452 = vmatmul.msk.f32.gmra.mxu2 %vm622_vm4, %v3608_v5  ;;  %v3762_v5 = vld [vmem:[%s4713_s1 + $0x210] sm:$0xff] }
 0x1da   :  { %v3746_v36 = vpop.f32.mrf.mxu3  ;;  %v3750_v57 = vpop.f32.mrf.mxu1 }
 0x1db   :  { %v730_v20 = vpop.f32.mrf.mxu0 }
 0x1dc   :  { %v802_v6 = vadd.f32 %v3628_v41, %v730_v20  ;;  %v869_v18 = vpop.f32.mrf.mxu2  ;;  %v2541_v41 = vunpack.i.h.bf16 %v2539_v28 }
 0x1dd   :  { %v941_v58 = vadd.f32 %v3626_v34, %v869_v18 }
 0x1de   :  { %v1062_v42 = vmul.f32 %v3748_v51, %v802_v6  ;;  %1419 = vmatmul.f32.gmra.mxu0 %v3640_v22  ;;  %v3778_v2 = vsel %vm1058_vm5, %v3748_v51, %v2541_v41 }
 0x1df   :  { %2440 = vmatmul.msk.f32.gmra.mxu3 %vm622_vm4, %v3756_v38  ;;  %1019 = vrot.lane.b32.xlu2 %v941_v58, %s2570_s15 }
 0x1e0   :  { %1086 = vrot.lane.b32.xlu1 %v1062_v42, %s2571_s22  ;;  %1292 = vmatmul.f32.gmra.mxu1 %v3762_v5 }
 0x1e1   :  { %2453 = vmatmul.msk.f32.gmra.mxu2 %vm622_vm4, %v3634_v29  ;;  %v3790_v29 = vld [vmem:[%s4713_s1 + $0x220] sm:$0xff] }
 0x1e2   :  { %v3773_v34 = vpop.f32.mrf.mxu3  ;;  %v3775_v31 = vpop.f32.mrf.mxu1 }
 0x1e3   :  { %v733_v22 = vpop.f32.mrf.mxu0 }
 0x1e4   :  { %v805_v24 = vadd.f32 %v3652_v43, %v733_v22  ;;  %v872_v52 = vpop.f32.mrf.mxu2  ;;  %v3856_v22 = vld [vmem:[%s4713_s1 + $0x258] sm:$0xff] }
 0x1e5   :  { %v944_v45 = vadd.f32 %v3650_v27, %v872_v52 }
 0x1e6   :  { %v1064_v17 = vmul.f32 %v3748_v51, %v805_v24  ;;  %1422 = vmatmul.f32.gmra.mxu0 %v3664_v0 }
 0x1e7   :  { %v1063_v49 = vmul.f32 %v3778_v2, %v944_v45  ;;  %2441 = vmatmul.msk.f32.gmra.mxu3 %vm622_vm4, %v3784_v61 }
 0x1e8   :  { %1090 = vrot.lane.b32.xlu0 %v1064_v17, %s2571_s22  ;;  %1295 = vmatmul.f32.gmra.mxu1 %v3790_v29  ;;  %v2544_v17 = vpop.permute.xlu1 %2543 }
 0x1e9   :  { %2454 = vmatmul.msk.f32.gmra.mxu2 %vm622_vm4, %v3658_v63  ;;  %1088 = vrot.lane.b32.xlu2 %v1063_v49, %s2571_s22  ;;  %v3814_v63 = vld [vmem:[%s4713_s1 + $0x230] sm:$0xff] }
 0x1ea   :  { %v1319_v27 = vpop.f32.mrf.mxu3  ;;  %v3802_v7 = vpop.f32.mrf.mxu1 }
 0x1eb   :  { %v736_v43 = vpop.f32.mrf.mxu0 }
 0x1ec   :  { %v808_v0 = vadd.f32 %v3676_v47, %v736_v43  ;;  %v875_v25 = vpop.f32.mrf.mxu2 }
 0x1ed   :  { %v947_v55 = vadd.f32 %v3674_v44, %v875_v25  ;;  %v3884_v25 = vld [vmem:[%s4713_s1 + $0x268] sm:$0xff] }
 0x1ee   :  { %v1066_v53 = vmul.f32 %v3748_v51, %v808_v0  ;;  %1425 = vmatmul.f32.gmra.mxu0 %v3688_v54  ;;  %v3830_v54 = vld [vmem:[%s4713_s1 + $0x248] sm:$0xff] }
 0x1ef   :  { %v1065_v4 = vmul.f32 %v3778_v2, %v947_v55  ;;  %2442 = vmatmul.msk.f32.gmra.mxu3 %vm622_vm4, %v3808_v14  ;;  %v3886_v55 = vpop.permute.xlu2 %2548 }
 0x1f0   :  { %1298 = vmatmul.f32.gmra.mxu1 %v3814_v63 }
 0x1f1   :  { %2455 = vmatmul.msk.f32.gmra.mxu2 %vm622_vm4, %v3682_v3  ;;  %1094 = vrot.lane.b32.xlu2 %v1066_v53, %s2571_s22  ;;  %v3838_v3 = vld [vmem:[%s4713_s1 + $0x240] sm:$0xff] }
 0x1f2   :  { %1092 = vrot.lane.b32.xlu1 %v1065_v4, %s2571_s22  ;;  %v1322_v44 = vpop.f32.mrf.mxu3 }
 0x1f3   :  { %v739_v47 = vpop.f32.mrf.mxu0 }
 0x1f4   :  { %v811_v28 = vadd.f32 %v3700_v16, %v739_v47  ;;  %v878_v20 = vpop.f32.mrf.mxu2 }
 0x1f5   :  { %v950_v6 = vadd.f32 %v3698_v46, %v878_v20  ;;  %v3833_v18 = vpop.f32.mrf.mxu1 }
 0x1f6   :  { %v1068_v58 = vmul.f32 %v3748_v51, %v811_v28  ;;  %1428 = vmatmul.f32.gmra.mxu0 %v3712_v33 }
 0x1f7   :  { %v1067_v16 = vmul.f32 %v3778_v2, %v950_v6  ;;  %2461 = vmatmul.msk.f32.vlgmr.msra.gmra.mxu3 %vm622_vm4, %v3830_v54  ;;  %v3913_v6 = vld [vmem:[%s4713_s1 + $0x278] sm:$0xff] }
 0x1f8   :  { %1864 = vmatmul.f32.vlgmr.msra.gmra.mxu1 %v3838_v3 }
 0x1f9   :  { %2456 = vmatmul.msk.f32.gmra.mxu2 %vm622_vm4, %v3706_v10  ;;  %1096 = vrot.lane.b32.xlu0 %v1067_v16, %s2571_s22  ;;  %v3864_v10 = vld [vmem:[%s4713_s1 + $0x250] sm:$0xff] }
 0x1fa   :  { %1098 = vrot.lane.b32.xlu1 %v1068_v58, %s2571_s22  ;;  %v3850_v46 = vpop.f32.mrf.mxu3 }
 0x1fb   :  { %v742_v42 = vpop.f32.mrf.mxu0 }
 0x1fc   :  { %v814_v41 = vadd.f32 %v3724_v13, %v742_v42  ;;  %v881_v33 = vpop.f32.mrf.mxu2  ;;  %v2546_v42 = vunpack.i.h.bf16 %v2544_v17 }
 0x1fd   :  { %v953_v24 = vadd.f32 %v3722_v50, %v881_v33  ;;  %v3859_v52 = vpop.f32.mrf.mxu1  ;;  %v1320_v50 = vadd.f32 %v1319_v27, %v3775_v31  ;;  %v3894_v31 = vld [vmem:[%s4713_s1 + $0x260] sm:$0xff]  ;;  %v3945_v33 = vld [vmem:[%s4713_s1 + $0x288] sm:$0xff] }
 0x1fe   :  { %v1070_v45 = vmul.f32 %v3748_v51, %v814_v41  ;;  %1431 = vmatmul.f32.gmra.mxu0 %v3736_v19  ;;  %v3879_v19 = vunpack.i.l.bf16 %v2544_v17 }
 0x1ff   :  { %v1069_v13 = vmul.f32 %v3778_v2, %v953_v24  ;;  %2462 = vmatmul.msk.f32.gmra.mxu3 %vm622_vm4, %v3856_v22 }
 0x200   :  { %1867 = vmatmul.f32.gmra.mxu1 %v3864_v10  ;;  %v1525_v27 = vmul.f32 %v3879_v19, %v1320_v50  ;;  %v3940_v41 = vsel %vm1521_vm6, %v3879_v19, %v2546_v42 }
 0x201   :  { %2457 = vmatmul.msk.f32.gmra.mxu2 %vm622_vm4, %v3730_v60  ;;  %1102 = vrot.lane.b32.xlu0 %v1070_v45, %s2571_s22  ;;  %v3950_v45 = vld [vmem:[%s4713_s1 + $0x280] sm:$0xff] }
 0x202   :  { %1100 = vrot.lane.b32.xlu2 %v1069_v13, %s2571_s22  ;;  %v3877_v49 = vpop.f32.mrf.mxu3 }
 0x203   :  { %v745_v43 = vpop.f32.mrf.mxu0 }
 0x204   :  { %v884_v0 = vpop.f32.mrf.mxu2  ;;  %v817_v28 = vadd.f32 %v3750_v57, %v745_v43  ;;  %v3925_v57 = vpop.permute.xlu2 %2558 }
 0x205   :  { %v956_v60 = vadd.f32 %v3746_v36, %v884_v0  ;;  %v3889_v53 = vpop.f32.mrf.mxu1  ;;  %v1323_v36 = vadd.f32 %v1322_v44, %v3802_v7  ;;  %v3921_v7 = vld [vmem:[%s4713_s1 + $0x270] sm:$0xff]  ;;  %v1326_v0 = vadd.f32 %v3850_v46, %v3833_v18 }
 0x206   :  { %1434 = vmatmul.f32.gmra.mxu0 %v3762_v5 }
 0x207   :  { %v1071_v4 = vmul.f32 %v3778_v2, %v956_v60  ;;  %2463 = vmatmul.msk.f32.gmra.mxu3 %vm622_vm4, %v3884_v25  ;;  %v1527_v44 = vmul.f32 %v3879_v19, %v1323_v36  ;;  %v3967_v60 = vld [vmem:[%s4713_s1 + $0x298] sm:$0xff]  ;;  %v3977_v36 = vpop.permute.xlu0 %2553  ;;  %v1529_v46 = vmul.f32 %v3879_v19, %v1326_v0 }
 0x208   :  { %1870 = vmatmul.f32.gmra.mxu1 %v3894_v31 }
 0x209   :  { %2458 = vmatmul.msk.f32.gmra.mxu2 %vm622_vm4, %v3756_v38  ;;  %1104 = vrot.lane.b32.xlu1 %v1071_v4, %s2571_s22 }
 0x20a   :  { %1549 = vrot.lane.b32.xlu2 %v1525_v27, %s2572_s13  ;;  %v3907_v47 = vpop.f32.mrf.mxu3 }
 0x20b   :  { %v1390_v5 = vpop.f32.mrf.mxu0 }
 0x20c   :  { %v887_v20 = vpop.f32.mrf.mxu2 }
 0x20d   :  { %v959_v38 = vadd.f32 %v3773_v34, %v887_v20  ;;  %v3916_v58 = vpop.f32.mrf.mxu1  ;;  %v1072_v34 = vmul.f32 %v3748_v51, %v817_v28 }
 0x20e   :  { %1437 = vmatmul.f32.gmra.mxu0 %v3790_v29 }
 0x20f   :  { %v1073_v16 = vmul.f32 %v3778_v2, %v959_v38  ;;  %2464 = vmatmul.msk.f32.gmra.mxu3 %vm622_vm4, %v3913_v6  ;;  %v1329_v38 = vadd.f32 %v3877_v49, %v3859_v52 }
 0x210   :  { %1873 = vmatmul.f32.gmra.mxu1 %v3921_v7  ;;  %v3957_v17 = vpop.permute.xlu2 %1001 }
 0x211   :  { %2459 = vmatmul.msk.f32.gmra.mxu2 %vm622_vm4, %v3784_v61  ;;  %1108 = vrot.lane.b32.xlu0 %v1073_v16, %s2571_s22  ;;  %v3996_v16 = vld [vmem:[%s4713_s1 + $0x2a8] sm:$0xff]  ;;  %v1531_v49 = vmul.f32 %v3879_v19, %v1329_v38 }
 0x212   :  { %1553 = vrot.lane.b32.xlu1 %v1527_v44, %s2572_s13  ;;  %1106 = vrot.lane.b32.xlu2 %v1072_v34, %s2571_s22  ;;  %v3937_v29 = vpop.f32.mrf.mxu3 }
 0x213   :  { %v1393_v2 = vpop.f32.mrf.mxu0 }
 0x214   :  { %v1461_v51 = vpop.f32.mrf.mxu2 }
 0x215   :  { %v1462_v24 = vadd.f32 %v1461_v51, %v1390_v5  ;;  %v1266_v61 = vpop.f32.mrf.mxu1 }
 0x216   :  { %1440 = vmatmul.f32.gmra.mxu0 %v3814_v63 }
 0x217   :  { %v1526_v13 = vmul.f32 %v3940_v41, %v1462_v24  ;;  %2465 = vmatmul.msk.f32.gmra.mxu3 %vm622_vm4, %v3945_v33 }
 0x218   :  { %1876 = vmatmul.f32.gmra.mxu1 %v3950_v45 }
 0x219   :  { %2460 = vmatmul.msk.f32.gmra.mxu2 %vm622_vm4, %v3808_v14  ;;  %1551 = vrot.lane.b32.xlu0 %v1526_v13, %s2572_s13  ;;  %v3974_v14 = vld [vmem:[%s4713_s1 + $0x290] sm:$0xff]  ;;  %v1332_v13 = vadd.f32 %v3907_v47, %v3889_v53  ;;  %v769_v53 = vadd.f32 %v3332_v9, %v3461_v21 }
 0x21a   :  { %v1337_v50 = vpop.f32.mrf.mxu3 }
 0x21b   :  { %v1396_v43 = vpop.f32.mrf.mxu0  ;;  %v1338_v47 = vadd.f32 %v1337_v50, %v1266_v61  ;;  %v1533_v38 = vmul.f32 %v3879_v19, %v1332_v13  ;;  %v963_v21 = vmul.f32 %v769_v53, %v3410_v37 }
 0x21c   :  { %v1464_v63 = vpop.f32.mrf.mxu2 }
 0x21d   :  { %v1465_v27 = vadd.f32 %v1464_v63, %v1393_v2  ;;  %v3969_v4 = vpop.f32.mrf.mxu1 }
 0x21e   :  { %2006 = vmatmul.f32.vlgmr.msra.gmra.mxu0 %v3838_v3 }
 0x21f   :  { %v1528_v18 = vmul.f32 %v3940_v41, %v1465_v27  ;;  %2466 = vmatmul.msk.f32.gmra.mxu3 %vm622_vm4, %v3967_v60 }
 0x220   :  { %1879 = vmatmul.f32.gmra.mxu1 %v3974_v14 }
 0x221   :  { %v1008_v5 = vpop.permute.xlu2 %1007  ;;  %2479 = vmatmul.msk.f32.vlgmr.msra.gmra.mxu2 %vm622_vm4, %v3830_v54  ;;  %1555 = vrot.lane.b32.xlu2 %v1528_v18, %s2572_s13  ;;  %v766_v54 = vadd.f32 %v3317_v62, %v3435_v35  ;;  %v998_v35 = vpop.permute.xlu0 %997 }
 0x222   :  { %v3988_v28 = vadd.f32 %v1008_v5, %v3541_v32  ;;  %1557 = vrot.lane.b32.xlu0 %v1529_v46, %s2572_s13  ;;  %v1340_v3 = vpop.f32.mrf.mxu3  ;;  %v4005_v32 = vld [vmem:[%s4713_s1 + $0x2a0] sm:$0xff]  ;;  %v4040_v46 = vld [vmem:[%s4713_s1 + $0x2b0] sm:$0xff] }
 0x223   :  { %v1399_v20 = vpop.f32.mrf.mxu0  ;;  %v961_v62 = vmul.f32 %v766_v54, %v3410_v37 }
 0x224   :  { %v1467_v44 = vpop.f32.mrf.mxu2 }
 0x225   :  { %v1468_v34 = vadd.f32 %v1467_v44, %v1396_v43  ;;  %v4000_v42 = vpop.f32.mrf.mxu1 }
 0x226   :  { %2009 = vmatmul.f32.gmra.mxu0 %v3864_v10 }
 0x227   :  { %v1530_v52 = vmul.f32 %v3940_v41, %v1468_v34  ;;  %2467 = vmatmul.msk.f32.gmra.mxu3 %vm622_vm4, %v3996_v16 }
 0x228   :  { %1882 = vmatmul.f32.gmra.mxu1 %v4005_v32 }
 0x229   :  { %2480 = vmatmul.msk.f32.gmra.mxu2 %vm622_vm4, %v3856_v22  ;;  %v1000_v2 = vpop.permute.xlu1 %999  ;;  %1559 = vrot.lane.b32.xlu1 %v1530_v52, %s2572_s13  ;;  %v4031_v22 = vld [vmem:[%s4713_s1 + $0x2b8] sm:$0xff]  ;;  %v1335_v52 = vadd.f32 %v3937_v29, %v3916_v58 }
 0x22a   :  { %v1022_v10 = vsel %vm1021_vm7, %v998_v35, %v1000_v2  ;;  %v4019_v51 = vadd.f32 %v1000_v2, %v3478_v40  ;;  %1561 = vrot.lane.b32.xlu2 %v1531_v49, %s2572_s13  ;;  %v4022_v24 = vpop.f32.mrf.mxu3  ;;  %v772_v40 = vadd.f32 %v3348_v8, %v3495_v1  ;;  %v4051_v1 = vpop.permute.xlu2 %1013  ;;  %v1341_v35 = vadd.f32 %v1340_v3, %v3969_v4 }
 0x22b   :  { %v4026_v43 = vadd.f32 %v1022_v10, %v961_v62  ;;  %v1402_v0 = vpop.f32.mrf.mxu0  ;;  %v4076_v62 = vld [vmem:[%s4713_s1 + $0x2c8] sm:$0xff]  ;;  %v1535_v29 = vmul.f32 %v3879_v19, %v1335_v52  ;;  %v4105_v19 = vld [vmem:[%s4713_s1 + $0x2d8] sm:$0xff] }
 0x22c   :  { %v1470_v63 = vpop.f32.mrf.mxu2  ;;  %v965_v8 = vmul.f32 %v772_v40, %v3410_v37 }
 0x22d   :  { %v1471_v27 = vadd.f32 %v1470_v63, %v1399_v20  ;;  %v4035_v18 = vpop.f32.mrf.mxu1  ;;  %v775_v63 = vadd.f32 %v3374_v30, %v3524_v59 }
 0x22e   :  { %2012 = vmatmul.f32.gmra.mxu0 %v3894_v31 }
 0x22f   :  { %v1532_v44 = vmul.f32 %v3940_v41, %v1471_v27  ;;  %2468 = vmatmul.msk.f32.gmra.mxu3 %vm622_vm4, %v4031_v22  ;;  %v967_v53 = vmul.f32 %v775_v63, %v3410_v37  ;;  %v4200_v63 = vld [vmem:[%s4713_s1 + $0x308] sm:$0xff] }
 0x230   :  { %1885 = vmatmul.f32.gmra.mxu1 %v4040_v46 }
 0x231   :  { %2481 = vmatmul.msk.f32.gmra.mxu2 %vm622_vm4, %v3884_v25  ;;  %v1006_v9 = vpop.permute.xlu1 %1005  ;;  %1565 = vrot.lane.b32.xlu1 %v1533_v38, %s2572_s13 }
 0x232   :  { %v1004_v31 = vpop.permute.xlu0 %1003  ;;  %v1024_v61 = vsel %vm1021_vm7, %v1006_v9, %v1008_v5  ;;  %1616 = vrot.lane.b32.xlu2 %v1338_v47, %s2573_s5  ;;  %1563 = vrot.lane.b32.xlu0 %v1532_v44, %s2572_s13  ;;  %v4060_v50 = vpop.f32.mrf.mxu3  ;;  %v4139_v9 = vld [vmem:[%s4713_s1 + $0x2e8] sm:$0xff] }
 0x233   :  { %v1023_v20 = vsel %vm1021_vm7, %v3957_v17, %v1004_v31  ;;  %v4065_v25 = vadd.f32 %v1004_v31, %v3508_v48  ;;  %v4067_v54 = vadd.f32 %v1024_v61, %v965_v8  ;;  %v1405_v34 = vpop.f32.mrf.mxu0  ;;  %v4084_v48 = vld [vmem:[%s4713_s1 + $0x2c0] sm:$0xff] }
 0x234   :  { %v4071_v5 = vadd.f32 %v1023_v20, %v963_v21  ;;  %v1473_v49 = vpop.f32.mrf.mxu2  ;;  %v778_v21 = vadd.f32 %v3407_v11, %v3552_v39 }
 0x235   :  { %v1474_v17 = vadd.f32 %v1473_v49, %v1402_v0  ;;  %v4079_v2 = vpop.f32.mrf.mxu1 }
 0x236   :  { %2015 = vmatmul.f32.gmra.mxu0 %v3921_v7  ;;  %v969_v11 = vmul.f32 %v778_v21, %v3410_v37 }
 0x237   :  { %v1534_v58 = vmul.f32 %v3940_v41, %v1474_v17  ;;  %2469 = vmatmul.msk.f32.gmra.mxu3 %vm622_vm4, %v4076_v62 }
 0x238   :  { %1888 = vmatmul.f32.gmra.mxu1 %v4084_v48 }
 0x239   :  { %v1020_v4 = vpop.permute.xlu2 %1019  ;;  %2482 = vmatmul.msk.f32.gmra.mxu2 %vm622_vm4, %v3913_v6  ;;  %1620 = vrot.lane.b32.xlu1 %v1341_v35, %s2573_s5 }
 0x23a   :  { %v4096_v3 = vadd.f32 %v1020_v4, %v3621_v26  ;;  %1567 = vrot.lane.b32.xlu2 %v1534_v58, %s2572_s13  ;;  %1569 = vrot.lane.b32.xlu0 %v1535_v29, %s2572_s13  ;;  %v4100_v7 = vpop.f32.mrf.mxu3  ;;  %v4112_v26 = vld [vmem:[%s4713_s1 + $0x2d0] sm:$0xff]  ;;  %v1010_v27 = vpop.permute.xlu0 %1009  ;;  %v1344_v29 = vadd.f32 %v4022_v24, %v4000_v42 }
 0x23b   :  { %v1408_v10 = vpop.f32.mrf.mxu0 }
 0x23c   :  { %v1476_v13 = vpop.f32.mrf.mxu2 }
 0x23d   :  { %v1477_v0 = vadd.f32 %v1476_v13, %v1405_v34  ;;  %v4107_v6 = vpop.f32.mrf.mxu1 }
 0x23e   :  { %2018 = vmatmul.f32.gmra.mxu0 %v3950_v45 }
 0x23f   :  { %v1536_v40 = vmul.f32 %v3940_v41, %v1477_v0  ;;  %2470 = vmatmul.msk.f32.gmra.mxu3 %vm622_vm4, %v4105_v19 }
 0x240   :  { %1891 = vmatmul.f32.gmra.mxu1 %v4112_v26 }
 0x241   :  { %2483 = vmatmul.msk.f32.gmra.mxu2 %vm622_vm4, %v3945_v33  ;;  %1571 = vrot.lane.b32.xlu1 %v1536_v40, %s2572_s13 }
 0x242   :  { %v1012_v47 = vpop.permute.xlu1 %1011  ;;  %v4125_v38 = vpop.f32.mrf.mxu3 }
 0x243   :  { %v1025_v30 = vsel %vm1021_vm7, %v1010_v27, %v1012_v47  ;;  %v4129_v59 = vadd.f32 %v1012_v47, %v3569_v12  ;;  %v1089_v41 = vpop.permute.xlu2 %1088  ;;  %v1411_v45 = vpop.f32.mrf.mxu0  ;;  %v4148_v12 = vld [vmem:[%s4713_s1 + $0x2e0] sm:$0xff] }
 0x244   :  { %v4131_v44 = vadd.f32 %v1025_v30, %v967_v53  ;;  %v4134_v8 = vadd.f32 %v1089_v41, %v4019_v51  ;;  %v1479_v33 = vpop.f32.mrf.mxu2  ;;  %v781_v51 = vadd.f32 %v3442_v56, %v3578_v15  ;;  %v1347_v53 = vadd.f32 %v4060_v50, %v4035_v18  ;;  %v4224_v18 = vld [vmem:[%s4713_s1 + $0x318] sm:$0xff] }
 0x245   :  { %v1480_v31 = vadd.f32 %v1479_v33, %v1408_v10  ;;  %v4143_v61 = vpop.f32.mrf.mxu1 }
 0x246   :  { %2021 = vmatmul.f32.gmra.mxu0 %v3974_v14  ;;  %v971_v20 = vmul.f32 %v781_v51, %v3410_v37  ;;  %v4176_v37 = vld [vmem:[%s4713_s1 + $0x2f8] sm:$0xff] }
 0x247   :  { %2471 = vmatmul.msk.f32.gmra.mxu3 %vm622_vm4, %v4139_v9  ;;  %1618 = vrot.lane.b32.xlu0 %v1480_v31, %s2573_s5 }
 0x248   :  { %1894 = vmatmul.f32.gmra.mxu1 %v4148_v12 }
 0x249   :  { %v1016_v39 = vpop.permute.xlu0 %1015  ;;  %2484 = vmatmul.msk.f32.gmra.mxu2 %vm622_vm4, %v3967_v60 }
 0x24a   :  { %v1026_v56 = vsel %vm1021_vm7, %v4051_v1, %v1016_v39  ;;  %v4164_v15 = vadd.f32 %v1016_v39, %v3595_v23  ;;  %v1018_v14 = vpop.permute.xlu1 %1017  ;;  %v4166_v34 = vpop.f32.mrf.mxu3  ;;  %v4181_v23 = vld [vmem:[%s4713_s1 + $0x2f0] sm:$0xff] }
 0x24b   :  { %v4168_v52 = vadd.f32 %v1026_v56, %v969_v11  ;;  %v1027_v49 = vsel %vm1021_vm7, %v1018_v14, %v1020_v4  ;;  %v1414_v35 = vpop.f32.mrf.mxu0  ;;  %v1095_v24 = vpop.permute.xlu2 %1094  ;;  %v4267_v14 = vld [vmem:[%s4713_s1 + $0x320] sm:$0xff] }
 0x24c   :  { %v4171_v17 = vadd.f32 %v1027_v49, %v971_v20  ;;  %v1482_v58 = vpop.f32.mrf.mxu2 }
 0x24d   :  { %v1483_v60 = vadd.f32 %v1482_v58, %v1411_v45  ;;  %v1287_v1 = vpop.f32.mrf.mxu1 }
 0x24e   :  { %2024 = vmatmul.f32.gmra.mxu0 %v4005_v32 }
 0x24f   :  { %2472 = vmatmul.msk.f32.gmra.mxu3 %vm622_vm4, %v4176_v37  ;;  %1622 = vrot.lane.b32.xlu2 %v1483_v60, %s2573_s5 }
 0x250   :  { %1624 = vrot.lane.b32.xlu0 %v1344_v29, %s2573_s5  ;;  %1897 = vmatmul.f32.gmra.mxu1 %v4181_v23 }
 0x251   :  { %2485 = vmatmul.msk.f32.gmra.mxu2 %vm622_vm4, %v3996_v16  ;;  %v4207_v16 = vld [vmem:[%s4713_s1 + $0x300] sm:$0xff] }
 0x252   :  { %v1358_v4 = vpop.f32.mrf.mxu3  ;;  %v1087_v10 = vpop.permute.xlu1 %1086 }
 0x253   :  { %v1111_v13 = vsel %vm1110_vm8, %v1087_v10, %v1089_v41  ;;  %v1417_v42 = vpop.f32.mrf.mxu0 }
 0x254   :  { %v4195_v32 = vadd.f32 %v1111_v13, %v4026_v43  ;;  %v1485_v0 = vpop.f32.mrf.mxu2 }
 0x255   :  { %v1486_v40 = vadd.f32 %v1485_v0, %v1414_v35  ;;  %v4202_v27 = vpop.f32.mrf.mxu1 }
 0x256   :  { %2027 = vmatmul.f32.gmra.mxu0 %v4040_v46  ;;  %v1350_v46 = vadd.f32 %v4100_v7, %v4079_v2 }
 0x257   :  { %2473 = vmatmul.msk.f32.gmra.mxu3 %vm622_vm4, %v4200_v63  ;;  %1626 = vrot.lane.b32.xlu1 %v1486_v40, %s2573_s5  ;;  %v4326_v40 = vld [vmem:[%s4713_s1 + $0x348] sm:$0xff] }
 0x258   :  { %1628 = vrot.lane.b32.xlu2 %v1347_v53, %s2573_s5  ;;  %1900 = vmatmul.f32.gmra.mxu1 %v4207_v16 }
 0x259   :  { %2486 = vmatmul.msk.f32.gmra.mxu2 %vm622_vm4, %v4031_v22  ;;  %v4236_v22 = vld [vmem:[%s4713_s1 + $0x310] sm:$0xff] }
 0x25a   :  { %v4219_v43 = vpop.f32.mrf.mxu3  ;;  %v1091_v7 = vpop.permute.xlu0 %1090 }
 0x25b   :  { %v1420_v47 = vpop.f32.mrf.mxu0 }
 0x25c   :  { %v1101_v30 = vpop.permute.xlu2 %1100  ;;  %v1488_v41 = vpop.f32.mrf.mxu2 }
 0x25d   :  { %v4229_v50 = vadd.f32 %v1101_v30, %v4129_v59  ;;  %v1489_v45 = vadd.f32 %v1488_v41, %v1417_v42  ;;  %v4231_v33 = vpop.f32.mrf.mxu1 }
 0x25e   :  { %2030 = vmatmul.f32.gmra.mxu0 %v4084_v48  ;;  %v4251_v48 = vld [vmem:[%s4713_s1 + $0x328] sm:$0xff] }
 0x25f   :  { %2474 = vmatmul.msk.f32.gmra.mxu3 %vm622_vm4, %v4224_v18  ;;  %1632 = vrot.lane.b32.xlu1 %v1350_v46, %s2573_s5 }
 0x260   :  { %1630 = vrot.lane.b32.xlu0 %v1489_v45, %s2573_s5  ;;  %1903 = vmatmul.f32.gmra.mxu1 %v4236_v22 }
 0x261   :  { %2487 = vmatmul.msk.f32.gmra.mxu2 %vm622_vm4, %v4076_v62  ;;  %v1353_v62 = vadd.f32 %v4125_v38, %v4107_v6 }
 0x262   :  { %v4246_v2 = vpop.f32.mrf.mxu3 }
 0x263   :  { %v1423_v59 = vpop.f32.mrf.mxu0 }
 0x264   :  { %v1093_v21 = vpop.permute.xlu1 %1092  ;;  %v1491_v11 = vpop.f32.mrf.mxu2 }
 0x265   :  { %v1112_v31 = vsel %vm1110_vm8, %v1091_v7, %v1093_v21  ;;  %v4255_v51 = vadd.f32 %v1093_v21, %v4065_v25  ;;  %v4257_v39 = vpop.f32.mrf.mxu1  ;;  %v1492_v56 = vadd.f32 %v1491_v11, %v1420_v47  ;;  %v1359_v25 = vadd.f32 %v1358_v4, %v1287_v1  ;;  %v4274_v6 = vpop.permute.xlu2 %1549 }
 0x266   :  { %v4262_v20 = vadd.f32 %v1112_v31, %v4071_v5  ;;  %2033 = vmatmul.f32.gmra.mxu0 %v4112_v26  ;;  %v4280_v5 = vunpack.i.l.bf16 %v3886_v55  ;;  %v1356_v26 = vadd.f32 %v4166_v34, %v4143_v61 }
 0x267   :  { %2475 = vmatmul.msk.f32.gmra.mxu3 %vm622_vm4, %v4251_v48  ;;  %1634 = vrot.lane.b32.xlu2 %v1492_v56, %s2573_s5 }
 0x268   :  { %1636 = vrot.lane.b32.xlu0 %v1353_v62, %s2573_s5  ;;  %1906 = vmatmul.f32.gmra.mxu1 %v4267_v14  ;;  %v1681_v29 = vmul.f32 %v4280_v5, %v1359_v25  ;;  %v1679_v13 = vmul.f32 %v4280_v5, %v1356_v26 }
 0x269   :  { %2488 = vmatmul.msk.f32.gmra.mxu2 %vm622_vm4, %v4105_v19  ;;  %v4293_v19 = vld [vmem:[%s4713_s1 + $0x338] sm:$0xff] }
 0x26a   :  { %v4284_v38 = vpop.f32.mrf.mxu3 }
 0x26b   :  { %v1097_v49 = vpop.permute.xlu0 %1096  ;;  %v1426_v35 = vpop.f32.mrf.mxu0 }
 0x26c   :  { %v1113_v58 = vsel %vm1110_vm8, %v1095_v24, %v1097_v49  ;;  %v4288_v60 = vadd.f32 %v1097_v49, %v3988_v28  ;;  %v1099_v1 = vpop.permute.xlu1 %1098  ;;  %v1494_v34 = vpop.f32.mrf.mxu2  ;;  %v2551_v24 = vunpack.i.h.bf16 %v3886_v55 }
 0x26d   :  { %v4297_v4 = vadd.f32 %v1113_v58, %v4067_v54  ;;  %v1114_v61 = vsel %vm1110_vm8, %v1099_v1, %v1101_v30  ;;  %v4300_v10 = vpop.f32.mrf.mxu1  ;;  %v1495_v42 = vadd.f32 %v1494_v34, %v1423_v59  ;;  %v4312_v54 = vld [vmem:[%s4713_s1 + $0x330] sm:$0xff]  ;;  %v4339_v30 = vld [vmem:[%s4713_s1 + $0x340] sm:$0xff]  ;;  %v1362_v59 = vadd.f32 %v4219_v43, %v4202_v27 }
 0x26e   :  { %v4304_v28 = vadd.f32 %v1114_v61, %v4131_v44  ;;  %2036 = vmatmul.f32.gmra.mxu0 %v4148_v12  ;;  %v1107_v12 = vpop.permute.xlu2 %1106  ;;  %v4329_v53 = vsel %vm1675_vm9, %v4280_v5, %v2551_v24  ;;  %v1792_v43 = vld [vmem:[%s4713_s1 + $0x350] sm:$0xff] }
 0x26f   :  { %2476 = vmatmul.msk.f32.gmra.mxu3 %vm622_vm4, %v4293_v19  ;;  %1638 = vrot.lane.b32.xlu1 %v1495_v42, %s2573_s5 }
 0x270   :  { %1703 = vrot.lane.b32.xlu0 %v1679_v13, %s2574_s10  ;;  %1707 = vrot.lane.b32.xlu2 %v1681_v29, %s2574_s10 }
 0x271   :  { %2489 = vmatmul.msk.f32.gmra.mxu2 %vm622_vm4, %v4139_v9  ;;  %1909 = vmatmul.f32.gmra.mxu1 %v4312_v54 }
 0x272   :  { %v4320_v44 = vpop.f32.mrf.mxu3 }
 0x273   :  { %v1429_v0 = vpop.f32.mrf.mxu0  ;;  %v1103_v46 = vpop.permute.xlu0 %1102 }
 0x274   :  { %v1497_v55 = vpop.f32.mrf.mxu2 }
 0x275   :  { %v4331_v47 = vpop.f32.mrf.mxu1  ;;  %v1498_v9 = vadd.f32 %v1497_v55, %v1426_v35 }
 0x276   :  { %2039 = vmatmul.f32.gmra.mxu0 %v4181_v23 }
 0x277   :  { %2477 = vmatmul.msk.f32.gmra.mxu3 %vm622_vm4, %v4326_v40  ;;  %v1680_v41 = vmul.f32 %v4329_v53, %v1498_v9 }
 0x279   :  { %2490 = vmatmul.msk.f32.gmra.mxu2 %vm622_vm4, %v4176_v37  ;;  %1705 = vrot.lane.b32.xlu1 %v1680_v41, %s2574_s10  ;;  %v1793_v37 = vld [vmem:[%s4713_s1 + $0x358] sm:$0xff]  ;;  %s2575_s1 = smov 100  }
 0x27a   :  { %v4345_v45 = vpop.f32.mrf.mxu3  ;;  %1912 = vmatmul.f32.gmra.mxu1 %v4339_v30 }
 0x27b   :  { %v1105_v23 = vpop.permute.xlu1 %1104  ;;  %v1556_v7 = vpop.permute.xlu2 %1555 }
 0x27c   :  { %v1115_v21 = vsel %vm1110_vm8, %v1103_v46, %v1105_v23  ;;  %v1138_v31 = vadd.f32 %v1105_v23, %v4164_v15  ;;  %v4353_v11 = vadd.f32 %v1556_v7, %v4255_v51  ;;  %v1432_v62 = vpop.f32.mrf.mxu0  ;;  %v1500_v25 = vpop.f32.mrf.mxu2  ;;  %v1683_v15 = vmul.f32 %v4280_v5, %v1362_v59 }
 0x27d   :  { %v4359_v56 = vadd.f32 %v1115_v21, %v4168_v52  ;;  %v4361_v26 = vpop.f32.mrf.mxu1  ;;  %v1501_v49 = vadd.f32 %v1500_v25, %v1429_v0  ;;  %v1365_v51 = vadd.f32 %v4246_v2, %v4231_v33 }
 0x27e   :  { %2042 = vmatmul.f32.gmra.mxu0 %v4207_v16 }
 0x27f   :  { %2478 = vmatmul.msk.f32.gmra.mxu3 %vm622_vm4, %v1793_v37  ;;  %v1682_v27 = vmul.f32 %v4329_v53, %v1501_v49  ;;  %v4441_v49 = vunpack.i.l.bf16 %v3977_v36 }
 0x281   :  { %2491 = vmatmul.msk.f32.gmra.mxu2 %vm622_vm4, %v4200_v63  ;;  %1711 = vrot.lane.b32.xlu1 %v1683_v15, %s2574_s10 }
 0x282   :  { %1709 = vrot.lane.b32.xlu0 %v1682_v27, %s2574_s10  ;;  %v1939_v52 = vpop.f32.mrf.mxu3  ;;  %1915 = vmatmul.f32.gmra.mxu1 %v1792_v43 }
 0x283   :  { %v1109_v16 = vpop.permute.xlu0 %1108 }
 0x284   :  { %v1116_v35 = vsel %vm1110_vm8, %v1107_v12, %v1109_v16  ;;  %v4378_v58 = vadd.f32 %v1109_v16, %v4096_v3  ;;  %v1554_v1 = vpop.permute.xlu1 %1553  ;;  %v4380_v29 = vpop.permute.xlu2 %1561  ;;  %v1685_v3 = vmul.f32 %v4280_v5, %v1365_v51 }
 0x285   :  { %v4383_v63 = vadd.f32 %v1116_v35, %v4171_v17  ;;  %v1575_v61 = vsel %vm1573_vm10, %v1554_v1, %v1556_v7  ;;  %v1503_v34 = vpop.f32.mrf.mxu2  ;;  %v4386_v13 = vpop.f32.mrf.mxu1 }
 0x286   :  { %v4389_v42 = vadd.f32 %v1575_v61, %v4262_v20  ;;  %v1504_v33 = vadd.f32 %v1503_v34, %v1432_v62  ;;  %v1435_v2 = vpop.f32.mrf.mxu0  ;;  %2045 = vmatmul.f32.gmra.mxu0 %v4236_v22  ;;  %v1368_v22 = vadd.f32 %v4284_v38, %v4257_v39 }
 0x287   :  { %2496 = vmatmul.msk.f32.vlgmr.msrb.gmra.mxu3 %vm622_vm4, %v1793_v37 }
 0x288   :  { %v1684_v24 = vmul.f32 %v4329_v53, %v1504_v33  ;;  %v1687_v39 = vmul.f32 %v4280_v5, %v1368_v22 }
 0x289   :  { %2492 = vmatmul.msk.f32.gmra.mxu2 %vm622_vm4, %v4224_v18 }
 0x28a   :  { %1713 = vrot.lane.b32.xlu2 %v1684_v24, %s2574_s10  ;;  %1715 = vrot.lane.b32.xlu0 %v1685_v3, %s2574_s10  ;;  %v4399_v17 = vpop.f32.mrf.mxu3 }
 0x28b   :  { %v1552_v20 = vpop.permute.xlu0 %1551  ;;  %2057 = vmatmul.f32.vlgmr.msrb.gmra.mxu1 %v1792_v43 }
 0x28c   :  { %v4403_v12 = vpop.permute.xlu2 %1616  ;;  %v1574_v0 = vsel %vm1573_vm10, %v4274_v6, %v1552_v20  ;;  %v4408_v55 = vadd.f32 %v1552_v20, %v4134_v8 }
 0x28d   :  { %v4411_v18 = vadd.f32 %v1574_v0, %v4195_v32  ;;  %v1506_v9 = vpop.f32.mrf.mxu2  ;;  %v4413_v41 = vpop.f32.mrf.mxu1  ;;  %v1371_v32 = vadd.f32 %v4320_v44, %v4300_v10  ;;  %v1940_v44 = vadd.f32 %v1939_v52, %v4361_v26 }
 0x28e   :  { %v1507_v46 = vadd.f32 %v1506_v9, %v1435_v2  ;;  %v1438_v23 = vpop.f32.mrf.mxu0  ;;  %2048 = vmatmul.f32.gmra.mxu0 %v4267_v14 }
 0x28f   :  { %v2142_v16 = vmul.f32 %v4441_v49, %v1940_v44 }
 0x290   :  { %v1686_v38 = vmul.f32 %v4329_v53, %v1507_v46 }
 0x291   :  { %2493 = vmatmul.msk.f32.gmra.mxu2 %vm622_vm4, %v4251_v48  ;;  %v1689_v48 = vmul.f32 %v4280_v5, %v1371_v32  ;;  %v1937_v5 = vadd.f32 %v4345_v45, %v4331_v47 }
 0x292   :  { %1717 = vrot.lane.b32.xlu1 %v1686_v38, %s2574_s10  ;;  %1719 = vrot.lane.b32.xlu2 %v1687_v39, %s2574_s10  ;;  %v4422_v8 = vpop.f32.mrf.mxu3 }
 0x293   :  { %v2140_v51 = vmul.f32 %v4441_v49, %v1937_v5 }
 0x294   :  { %v1568_v6 = vpop.permute.xlu2 %1567 }
 0x295   :  { %v4426_v7 = vadd.f32 %v1568_v6, %v1138_v31  ;;  %v1509_v14 = vpop.f32.mrf.mxu2  ;;  %v4428_v59 = vpop.f32.mrf.mxu1 }
 0x296   :  { %v1510_v21 = vadd.f32 %v1509_v14, %v1438_v23  ;;  %v1441_v37 = vpop.f32.mrf.mxu0  ;;  %2051 = vmatmul.f32.gmra.mxu0 %v4312_v54  ;;  %v1558_v31 = vpop.permute.xlu0 %1557 }
 0x298   :  { %v1688_v62 = vmul.f32 %v4329_v53, %v1510_v21 }
 0x299   :  { %2494 = vmatmul.msk.f32.gmra.mxu2 %vm622_vm4, %v4293_v19 }
 0x29a   :  { %1723 = vrot.lane.b32.xlu1 %v1689_v48, %s2574_s10  ;;  %1721 = vrot.lane.b32.xlu0 %v1688_v62, %s2574_s10  ;;  %v4437_v10 = vpop.f32.mrf.mxu3 }
 0x29b   :  { %v1560_v25 = vpop.permute.xlu1 %1559 }
 0x29c   :  { %v1576_v54 = vsel %vm1573_vm10, %v1558_v31, %v1560_v25  ;;  %v4447_v19 = vadd.f32 %v1560_v25, %v4288_v60 }
 0x29d   :  { %v4450_v15 = vadd.f32 %v1576_v54, %v4297_v4  ;;  %v1512_v27 = vpop.f32.mrf.mxu2  ;;  %v4452_v43 = vpop.f32.mrf.mxu1  ;;  %v2556_v4 = vunpack.i.h.bf16 %v3977_v36  ;;  %v1949_v54 = vadd.f32 %v4437_v10, %v4428_v59 }
 0x29e   :  { %v1513_v26 = vadd.f32 %v1512_v27, %v1441_v37  ;;  %v2007_v52 = vpop.f32.mrf.mxu0  ;;  %2054 = vmatmul.f32.gmra.mxu0 %v4339_v30 }
 0x29f   :  { %v4479_v2 = vsel %vm2136_vm11, %v4441_v49, %v2556_v4 }
 0x2a0   :  { %v1690_v47 = vmul.f32 %v4329_v53, %v1513_v26 }
 0x2a1   :  { %2495 = vmatmul.msk.f32.gmra.mxu2 %vm622_vm4, %v4326_v40  ;;  %vm1640_vm4 = vcmask 924672  }
 0x2a2   :  { %2164 = vrot.lane.b32.xlu1 %v2140_v51, %s2575_s1  ;;  %1725 = vrot.lane.b32.xlu2 %v1690_v47, %s2574_s10  ;;  %v4462_v60 = vpop.f32.mrf.mxu3  ;;  %v2148_v51 = vmul.f32 %v4441_v49, %v1949_v54 }
 0x2a3   :  { %2168 = vrot.lane.b32.xlu0 %v2142_v16, %s2575_s1  ;;  %v1566_v30 = vpop.permute.xlu1 %1565 }
 0x2a4   :  { %v1578_v45 = vsel %vm1573_vm10, %v1566_v30, %v1568_v6  ;;  %v1564_v35 = vpop.permute.xlu0 %1563 }
 0x2a5   :  { %v4468_v53 = vadd.f32 %v1578_v45, %v4359_v56  ;;  %v1577_v40 = vsel %vm1573_vm10, %v4380_v29, %v1564_v35  ;;  %v4473_v1 = vadd.f32 %v1564_v35, %v4229_v50  ;;  %v2078_v61 = vpop.f32.mrf.mxu2  ;;  %v1883_v3 = vpop.f32.mrf.mxu1 }
 0x2a6   :  { %v4476_v34 = vadd.f32 %v1577_v40, %v4304_v28  ;;  %v2079_v36 = vadd.f32 %v2078_v61, %v2007_v52  ;;  %v2010_v33 = vpop.f32.mrf.mxu0  ;;  %v1943_v28 = vadd.f32 %v4399_v17, %v4386_v13  ;;  %v1946_v17 = vadd.f32 %v4422_v8, %v4413_v41 }
 0x2a8   :  { %v2141_v24 = vmul.f32 %v4479_v2, %v2079_v36  ;;  %v2144_v39 = vmul.f32 %v4441_v49, %v1943_v28  ;;  %v2146_v44 = vmul.f32 %v4441_v49, %v1946_v17 }
 0x2a9   :  { %v1623_v56 = vpop.permute.xlu2 %1622 }
 0x2aa   :  { %2166 = vrot.lane.b32.xlu2 %v2141_v24, %s2575_s1  ;;  %v4484_v29 = vadd.f32 %v1623_v56, %v4353_v11  ;;  %v1954_v50 = vpop.f32.mrf.mxu3 }
 0x2ab   :  { %v1621_v20 = vpop.permute.xlu1 %1620  ;;  %v1955_v35 = vadd.f32 %v1954_v50, %v1883_v3 }
 0x2ac   :  { %v1642_v22 = vsel %vm1640_vm4, %v1621_v20, %v1623_v56  ;;  %v1570_v32 = vpop.permute.xlu0 %1569 }
 0x2ad   :  { %v4490_v0 = vadd.f32 %v1642_v22, %v4389_v42  ;;  %v2081_v9 = vpop.f32.mrf.mxu2  ;;  %v1886_v11 = vpop.f32.mrf.mxu1 }
 0x2ae   :  { %v2082_v46 = vadd.f32 %v2081_v9, %v2010_v33  ;;  %v2013_v23 = vpop.f32.mrf.mxu0 }
 0x2b0   :  { %v2143_v38 = vmul.f32 %v4479_v2, %v2082_v46 }
 0x2b2   :  { %2170 = vrot.lane.b32.xlu1 %v2143_v38, %s2575_s1  ;;  %2172 = vrot.lane.b32.xlu2 %v2144_v39, %s2575_s1  ;;  %v1957_v6 = vpop.f32.mrf.mxu3  ;;  %v1629_v5 = vpop.permute.xlu2 %1628 }
 0x2b3   :  { %v1572_v13 = vpop.permute.xlu1 %1571 }
 0x2b4   :  { %v1579_v42 = vsel %vm1573_vm10, %v1570_v32, %v1572_v13  ;;  %v4500_v14 = vadd.f32 %v1572_v13, %v4378_v58 }
 0x2b5   :  { %v4503_v21 = vadd.f32 %v1579_v42, %v4383_v63  ;;  %v2084_v37 = vpop.f32.mrf.mxu2  ;;  %v1889_v8 = vpop.f32.mrf.mxu1 }
 0x2b6   :  { %v2085_v48 = vadd.f32 %v2084_v37, %v2013_v23  ;;  %v2016_v62 = vpop.f32.mrf.mxu0 }
 0x2b8   :  { %v2145_v31 = vmul.f32 %v4479_v2, %v2085_v48 }
 0x2b9   :  { %v1619_v25 = vpop.permute.xlu0 %1618 }
 0x2ba   :  { %2176 = vrot.lane.b32.xlu1 %v2146_v44, %s2575_s1  ;;  %2174 = vrot.lane.b32.xlu0 %v2145_v31, %s2575_s1  ;;  %v1641_v58 = vsel %vm1640_vm4, %v4403_v12, %v1619_v25  ;;  %v4512_v41 = vadd.f32 %v1619_v25, %v4408_v55  ;;  %v1960_v27 = vpop.f32.mrf.mxu3 }
 0x2bb   :  { %v4515_v63 = vadd.f32 %v1641_v58, %v4411_v18  ;;  %v1952_v18 = vadd.f32 %v4462_v60, %v4452_v43  ;;  %v1961_v42 = vadd.f32 %v1960_v27, %v1889_v8 }
 0x2bd   :  { %v2087_v26 = vpop.f32.mrf.mxu2  ;;  %v1892_v59 = vpop.f32.mrf.mxu1  ;;  %v2150_v61 = vmul.f32 %v4441_v49, %v1952_v18  ;;  %v1958_v49 = vadd.f32 %v1957_v6, %v1886_v11 }
 0x2be   :  { %v2088_v52 = vadd.f32 %v2087_v26, %v2016_v62  ;;  %v2019_v16 = vpop.f32.mrf.mxu0 }
 0x2c0   :  { %v2147_v47 = vmul.f32 %v4479_v2, %v2088_v52 }
 0x2c1   :  { %v1635_v12 = vpop.permute.xlu2 %1634 }
 0x2c2   :  { %2178 = vrot.lane.b32.xlu2 %v2147_v47, %s2575_s1  ;;  %2180 = vrot.lane.b32.xlu0 %v2148_v51, %s2575_s1  ;;  %v4524_v55 = vadd.f32 %v1635_v12, %v4426_v7  ;;  %v1963_v4 = vpop.f32.mrf.mxu3  ;;  %v1625_v36 = vpop.permute.xlu0 %1624 }
 0x2c3   :  { %v1964_v54 = vadd.f32 %v1963_v4, %v1892_v59 }
 0x2c5   :  { %v2090_v10 = vpop.f32.mrf.mxu2  ;;  %v1895_v56 = vpop.f32.mrf.mxu1 }
 0x2c6   :  { %v2091_v30 = vadd.f32 %v2090_v10, %v2019_v16  ;;  %v2022_v45 = vpop.f32.mrf.mxu0 }
 0x2c8   :  { %v2149_v40 = vmul.f32 %v4479_v2, %v2091_v30 }
 0x2c9   :  { %v1627_v33 = vpop.permute.xlu1 %1626 }
 0x2ca   :  { %2182 = vrot.lane.b32.xlu1 %v2149_v40, %s2575_s1  ;;  %v1643_v7 = vsel %vm1640_vm4, %v1625_v36, %v1627_v33  ;;  %v1664_v24 = vadd.f32 %v1627_v33, %v4447_v19  ;;  %2231 = vrot.lane.b32.xlu2 %v1955_v35, %s2576_s19  ;;  %v1966_v50 = vpop.f32.mrf.mxu3 }
 0x2cb   :  { %v4535_v43 = vadd.f32 %v1643_v7, %v4450_v15  ;;  %2184 = vrot.lane.b32.xlu0 %v2150_v61, %s2575_s1 }
 0x2cd   :  { %v2093_v60 = vpop.f32.mrf.mxu2  ;;  %v1898_v6 = vpop.f32.mrf.mxu1 }
 0x2ce   :  { %v2025_v3 = vpop.f32.mrf.mxu0  ;;  %v2094_v46 = vadd.f32 %v2093_v60, %v2022_v45 }
 0x2d0   :  { %v2151_v11 = vmul.f32 %v4479_v2, %v2094_v46 }
 0x2d1   :  { %v1633_v20 = vpop.permute.xlu1 %1632 }
 0x2d2   :  { %2235 = vrot.lane.b32.xlu1 %v1958_v49, %s2576_s19  ;;  %v1645_v28 = vsel %vm1640_vm4, %v1633_v20, %v1635_v12  ;;  %v1631_v22 = vpop.permute.xlu0 %1630  ;;  %v1969_v13 = vpop.f32.mrf.mxu3  ;;  %v1967_v12 = vadd.f32 %v1966_v50, %v1895_v56 }
 0x2d3   :  { %v4541_v19 = vadd.f32 %v1645_v28, %v4468_v53  ;;  %v1644_v9 = vsel %vm1640_vm4, %v1629_v5, %v1631_v22  ;;  %v4545_v15 = vadd.f32 %v1631_v22, %v4473_v1  ;;  %v1708_v53 = vpop.permute.xlu2 %1707  ;;  %v1970_v33 = vadd.f32 %v1969_v13, %v1898_v6 }
 0x2d4   :  { %v4548_v23 = vadd.f32 %v1644_v9, %v4476_v34 }
 0x2d5   :  { %v2096_v39 = vpop.f32.mrf.mxu2  ;;  %v1901_v62 = vpop.f32.mrf.mxu1 }
 0x2d6   :  { %v2097_v38 = vadd.f32 %v2096_v39, %v2025_v3  ;;  %v2028_v32 = vpop.f32.mrf.mxu0 }
 0x2d8   :  { %2233 = vrot.lane.b32.xlu0 %v2097_v38, %s2576_s19  ;;  %v2561_v38 = vunpack.i.h.bf16 %v3925_v57 }
 0x2da   :  { %2186 = vrot.lane.b32.xlu1 %v2151_v11, %s2575_s1  ;;  %v1637_v34 = vpop.permute.xlu0 %1636  ;;  %v1972_v31 = vpop.f32.mrf.mxu3 }
 0x2db   :  { %v1973_v49 = vadd.f32 %v1972_v31, %v1901_v62 }
 0x2dd   :  { %v2099_v17 = vpop.f32.mrf.mxu2  ;;  %v1904_v51 = vpop.f32.mrf.mxu1 }
 0x2de   :  { %v2100_v1 = vadd.f32 %v2099_v17, %v2028_v32  ;;  %v2031_v37 = vpop.f32.mrf.mxu0 }
 0x2e0   :  { %2237 = vrot.lane.b32.xlu2 %v2100_v1, %s2576_s19  ;;  %2239 = vrot.lane.b32.xlu0 %v1961_v42, %s2576_s19 }
 0x2e1   :  { %v1639_v48 = vpop.permute.xlu1 %1638 }
 0x2e2   :  { %v1646_v2 = vsel %vm1640_vm4, %v1637_v34, %v1639_v48  ;;  %v1670_v44 = vadd.f32 %v1639_v48, %v4500_v14  ;;  %v1704_v52 = vpop.permute.xlu0 %1703  ;;  %v1975_v18 = vpop.f32.mrf.mxu3 }
 0x2e3   :  { %v4558_v25 = vadd.f32 %v1646_v2, %v4503_v21  ;;  %v1976_v46 = vadd.f32 %v1975_v18, %v1904_v51 }
 0x2e4   :  { %v1714_v5 = vpop.permute.xlu2 %1713 }
 0x2e5   :  { %v4560_v58 = vadd.f32 %v1714_v5, %v1664_v24  ;;  %v2102_v8 = vpop.f32.mrf.mxu2  ;;  %v1907_v3 = vpop.f32.mrf.mxu1 }
 0x2e6   :  { %v2103_v27 = vadd.f32 %v2102_v8, %v2031_v37  ;;  %v2034_v26 = vpop.f32.mrf.mxu0 }
 0x2e8   :  { %2241 = vrot.lane.b32.xlu1 %v2103_v27, %s2576_s19  ;;  %2243 = vrot.lane.b32.xlu2 %v1964_v54, %s2576_s19 }
 0x2ea   :  { %v1978_v56 = vpop.f32.mrf.mxu3 }
 0x2eb   :  { %v1706_v16 = vpop.permute.xlu1 %1705 }
 0x2ec   :  { %v1728_v14 = vsel %vm1727_vm12, %v1704_v52, %v1706_v16  ;;  %v1747_v21 = vadd.f32 %v1706_v16, %v4512_v41  ;;  %v1720_v30 = vpop.permute.xlu2 %1719 }
 0x2ed   :  { %v2105_v47 = vpop.f32.mrf.mxu2  ;;  %v4567_v10 = vadd.f32 %v1728_v14, %v4515_v63 }
 0x2ee   :  { %v2106_v59 = vadd.f32 %v2105_v47, %v2034_v26  ;;  %v2037_v4 = vpop.f32.mrf.mxu0  ;;  %v1910_v9 = vpop.f32.mrf.mxu1 }
 0x2f0   :  { %2247 = vrot.lane.b32.xlu1 %v1967_v12, %s2576_s19  ;;  %2245 = vrot.lane.b32.xlu0 %v2106_v59, %s2576_s19 }
 0x2f2   :  { %v1981_v39 = vpop.f32.mrf.mxu3 }
 0x2f3   :  { %v1712_v45 = vpop.permute.xlu1 %1711  ;;  %v1982_v12 = vadd.f32 %v1981_v39, %v1910_v9 }
 0x2f4   :  { %v1710_v35 = vpop.permute.xlu0 %1709  ;;  %v1730_v40 = vsel %vm1727_vm12, %v1712_v45, %v1714_v5 }
 0x2f5   :  { %v1729_v61 = vsel %vm1727_vm12, %v1708_v53, %v1710_v35  ;;  %v4574_v41 = vadd.f32 %v1710_v35, %v4484_v29  ;;  %v2108_v36 = vpop.f32.mrf.mxu2  ;;  %v4577_v63 = vadd.f32 %v1730_v40, %v4535_v43  ;;  %v4585_v29 = vunpack.i.l.bf16 %v3925_v57 }
 0x2f6   :  { %v4580_v7 = vadd.f32 %v1729_v61, %v4490_v0  ;;  %v2109_v24 = vadd.f32 %v2108_v36, %v2037_v4  ;;  %v2040_v60 = vpop.f32.mrf.mxu0 }
 0x2f7   :  { %v2294_v28 = vmul.f32 %v4585_v29, %v1973_v49  ;;  %v2296_v1 = vmul.f32 %v4585_v29, %v1976_v46  ;;  %v2291_v57 = vsel %vm2290_vm13, %v4585_v29, %v2561_v38  ;;  %v1913_v2 = vpop.f32.mrf.mxu1  ;;  %v2300_v35 = vmul.f32 %v4585_v29, %v1982_v12 }
 0x2f8   :  { %2249 = vrot.lane.b32.xlu2 %v2109_v24, %s2576_s19  ;;  %2251 = vrot.lane.b32.xlu0 %v1970_v33, %s2576_s19 }
 0x2fc   :  { %v1726_v50 = vpop.permute.xlu2 %1725  ;;  %v1716_v32 = vpop.permute.xlu0 %1715 }
 0x2fd   :  { %v4587_v20 = vadd.f32 %v1726_v50, %v1670_v44  ;;  %v2111_v43 = vpop.f32.mrf.mxu2  ;;  %v1979_v44 = vadd.f32 %v1978_v56, %v1907_v3 }
 0x2fe   :  { %v2112_v0 = vadd.f32 %v2111_v43, %v2040_v60  ;;  %v2043_v22 = vpop.f32.mrf.mxu0 }
 0x2ff   :  { %v2298_v14 = vmul.f32 %v4585_v29, %v1979_v44  ;;  %v1916_v4 = vpop.f32.mrf.mxu1 }
 0x300   :  { %2253 = vrot.lane.b32.xlu1 %v2112_v0, %s2576_s19  ;;  %2318 = vrot.lane.b32.xlu2 %v2294_v28, %s2577_s20 }
 0x304   :  { %v1718_v11 = vpop.permute.xlu1 %1717  ;;  %v2167_v6 = vpop.permute.xlu2 %2166 }
 0x305   :  { %v1731_v13 = vsel %vm1727_vm12, %v1716_v32, %v1718_v11  ;;  %v1753_v53 = vadd.f32 %v1718_v11, %v4545_v15  ;;  %v4595_v17 = vadd.f32 %v2167_v6, %v1747_v21  ;;  %v2114_v42 = vpop.f32.mrf.mxu2  ;;  %v1984_v15 = vpop.f32.mrf.mxu3 }
 0x306   :  { %v4599_v37 = vadd.f32 %v1731_v13, %v4548_v23  ;;  %v2115_v34 = vadd.f32 %v2114_v42, %v2043_v22  ;;  %v2046_v48 = vpop.f32.mrf.mxu0  ;;  %v1985_v61 = vadd.f32 %v1984_v15, %v1913_v2 }
 0x308   :  { %v2295_v62 = vmul.f32 %v2291_v57, %v2115_v34  ;;  %2322 = vrot.lane.b32.xlu1 %v2296_v1, %s2577_s20  ;;  %v2058_v56 = vpop.f32.mrf.mxu1 }
 0x30a   :  { %2320 = vrot.lane.b32.xlu0 %v2295_v62, %s2577_s20 }
 0x30c   :  { %v1724_v31 = vpop.permute.xlu1 %1723  ;;  %v1722_v8 = vpop.permute.xlu0 %1721 }
 0x30d   :  { %v1733_v5 = vsel %vm1727_vm12, %v1724_v31, %v1726_v50  ;;  %v2117_v54 = vpop.f32.mrf.mxu2  ;;  %v1732_v27 = vsel %vm1727_vm12, %v1720_v30, %v1722_v8  ;;  %v4610_v26 = vadd.f32 %v1722_v8, %v4524_v55  ;;  %v2173_v47 = vpop.permute.xlu2 %2172 }
 0x30e   :  { %v4606_v23 = vadd.f32 %v1733_v5, %v4558_v25  ;;  %v1754_v52 = vadd.f32 %v1732_v27, %v4541_v19  ;;  %v2118_v16 = vadd.f32 %v2117_v54, %v2046_v48  ;;  %v2049_v51 = vpop.f32.mrf.mxu0  ;;  %v1987_v30 = vpop.f32.mrf.mxu3 }
 0x30f   :  { %v1988_v22 = vadd.f32 %v1987_v30, %v1916_v4 }
 0x310   :  { %v2297_v21 = vmul.f32 %v2291_v57, %v2118_v16 }
 0x311   :  { %v2304_v32 = vmul.f32 %v4585_v29, %v1988_v22 }
 0x312   :  { %2326 = vrot.lane.b32.xlu0 %v2298_v14, %s2577_s20  ;;  %2324 = vrot.lane.b32.xlu2 %v2297_v21, %s2577_s20 }
 0x314   :  { %v2165_v25 = vpop.permute.xlu1 %2164 }
 0x315   :  { %v2189_v18 = vsel %vm2188_vm14, %v2165_v25, %v2167_v6  ;;  %v2120_v59 = vpop.f32.mrf.mxu2  ;;  %v2169_v28 = vpop.permute.xlu0 %2168 }
 0x316   :  { %v4618_v55 = vadd.f32 %v2189_v18, %v4567_v10  ;;  %v2121_v19 = vadd.f32 %v2120_v59, %v2049_v51  ;;  %v2052_v40 = vpop.f32.mrf.mxu0  ;;  %v2302_v10 = vmul.f32 %v4585_v29, %v1985_v61  ;;  %v2129_v49 = vpop.f32.mrf.mxu3 }
 0x317   :  { %v2130_v43 = vadd.f32 %v2129_v49, %v2058_v56 }
 0x318   :  { %v2299_v45 = vmul.f32 %v2291_v57, %v2121_v19 }
 0x319   :  { %v2305_v39 = vmul.f32 %v2291_v57, %v2130_v43 }
 0x31a   :  { %2328 = vrot.lane.b32.xlu1 %v2299_v45, %s2577_s20  ;;  %2330 = vrot.lane.b32.xlu2 %v2300_v35, %s2577_s20 }
 0x31c   :  { %v2179_v36 = vpop.permute.xlu2 %2178 }
 0x31d   :  { %v4623_v33 = vadd.f32 %v2179_v36, %v1753_v53  ;;  %v2123_v24 = vpop.f32.mrf.mxu2 }
 0x31e   :  { %v2124_v60 = vadd.f32 %v2123_v24, %v2052_v40  ;;  %v2055_v50 = vpop.f32.mrf.mxu0 }
 0x320   :  { %v2301_v3 = vmul.f32 %v2291_v57, %v2124_v60 }
 0x322   :  { %2334 = vrot.lane.b32.xlu1 %v2302_v10, %s2577_s20  ;;  %2332 = vrot.lane.b32.xlu0 %v2301_v3, %s2577_s20 }
 0x324   :  { %v2171_v0 = vpop.permute.xlu1 %2170  ;;  %v2232_v2 = vpop.permute.xlu2 %2231 }
 0x325   :  { %v2126_v9 = vpop.f32.mrf.mxu2  ;;  %v2190_v59 = vsel %vm2188_vm14, %v2169_v28, %v2171_v0 }
 0x326   :  { %v2127_v46 = vadd.f32 %v2126_v9, %v2055_v50 }
 0x328   :  { %v2303_v38 = vmul.f32 %v2291_v57, %v2127_v46 }
 0x32a   :  { %2340 = vrot.lane.b32.xlu1 %v2305_v39, %s2577_s20  ;;  %2336 = vrot.lane.b32.xlu2 %v2303_v38, %s2577_s20 }
 0x32b   :  { %2338 = vrot.lane.b32.xlu0 %v2304_v32, %s2577_s20 }
 0x32c   :  { %v2177_v11 = vpop.permute.xlu1 %2176  ;;  %v2175_v6 = vpop.permute.xlu0 %2174 }
 0x32d   :  { %v2192_v13 = vsel %vm2188_vm14, %v2177_v11, %v2179_v36  ;;  %v2191_v53 = vsel %vm2188_vm14, %v2173_v47, %v2175_v6  ;;  %v2212_v42 = vadd.f32 %v2175_v6, %v4560_v58 }
 0x32e   :  { %v4636_v1 = vadd.f32 %v2192_v13, %v4599_v37  ;;  %v2211_v34 = vadd.f32 %v2191_v53, %v4577_v63 }
 0x334   :  { %v2181_v29 = vpop.permute.xlu0 %2180 }
 0x33a   :  { %v2238_v15 = vpop.permute.xlu2 %2237 }
 0x33c   :  { %v2183_v48 = vpop.permute.xlu1 %2182 }
 0x33d   :  { %v2193_v57 = vsel %vm2188_vm14, %v2181_v29, %v2183_v48  ;;  %v2185_v31 = vpop.permute.xlu0 %2184 }
 0x33e   :  { %v2215_v62 = vadd.f32 %v2193_v57, %v1754_v52  ;;  %v2210_v52 = vadd.f32 %v2171_v0, %v4574_v41  ;;  %v2209_v41 = vadd.f32 %v2190_v59, %v4580_v7 }
 0x340   :  { %v2277_v47 = vadd.f32 %v2238_v15, %v2210_v52 }
 0x342   :  { %v2244_v37 = vpop.permute.xlu2 %2243 }
 0x344   :  { %v2236_v44 = vpop.permute.xlu1 %2235 }
 0x345   :  { %v2257_v19 = vsel %vm2255_vm0, %v2236_v44, %v2238_v15 }
 0x346   :  { %v2276_v30 = vadd.f32 %v2257_v19, %v2209_v41 }
 0x34a   :  { %v2234_v54 = vpop.permute.xlu0 %2233 }
 0x34b   :  { %v2256_v4 = vsel %vm2255_vm0, %v2232_v2, %v2234_v54  ;;  %v2275_v35 = vadd.f32 %v2234_v54, %v4595_v17  ;;  %v2216_v17 = vadd.f32 %v2183_v48, %v4610_v26 }
 0x34c   :  { %v4640_v5 = vpop.permute.xlu1 %2186  ;;  %v2274_v61 = vadd.f32 %v2256_v4, %v4618_v55 }
 0x34d   :  { %v2194_v8 = vsel %vm2188_vm14, %v2185_v31, %v4640_v5 }
 0x34e   :  { %v4645_v58 = vadd.f32 %v2194_v8, %v4606_v23 }
 0x352   :  { %v2250_v63 = vpop.permute.xlu2 %2249  ;;  %v2240_v16 = vpop.permute.xlu0 %2239 }
 0x353   :  { %v2283_v55 = vadd.f32 %v2250_v63, %v2216_v17 }
 0x35a   :  { %v2242_v27 = vpop.permute.xlu1 %2241  ;;  %v2319_v51 = vpop.permute.xlu2 %2318 }
 0x35b   :  { %v2258_v50 = vsel %vm2255_vm0, %v2240_v16, %v2242_v27  ;;  %v2279_v43 = vadd.f32 %v2242_v27, %v2212_v42 }
 0x35c   :  { %v2278_v28 = vadd.f32 %v2258_v50, %v2211_v34 }
 0x362   :  { %v2248_v14 = vpop.permute.xlu1 %2247  ;;  %v2246_v21 = vpop.permute.xlu0 %2245 }
 0x363   :  { %v2260_v26 = vsel %vm2255_vm0, %v2248_v14, %v2250_v63  ;;  %v2259_v38 = vsel %vm2255_vm0, %v2244_v37, %v2246_v21  ;;  %v2281_v32 = vadd.f32 %v2246_v21, %v4623_v33  ;;  %v2218_v33 = vadd.f32 %v4640_v5, %v4587_v20 }
 0x364   :  { %v2282_v11 = vadd.f32 %v2260_v26, %v2215_v62  ;;  %v2280_v6 = vadd.f32 %v2259_v38, %v4636_v1 }
 0x36a   :  { %v2252_v18 = vpop.permute.xlu0 %2251 }
 0x36c   :  { %v2325_v25 = vpop.permute.xlu2 %2324 }
 0x36d   :  { %v2363_v12 = vadd.f32 %v2325_v25, %v2277_v47 }
 0x36f   :  { %2376 = vst.msk [vmem:[%s4714_s2 + $0x18] sm:$0xff] %vm2373_vm15, %v2363_v12 }
 0x372   :  { %v2254_v23 = vpop.permute.xlu1 %2253 }
 0x373   :  { %v2261_v1 = vsel %vm2255_vm0, %v2252_v18, %v2254_v23  ;;  %v2285_v62 = vadd.f32 %v2254_v23, %v2218_v33 }
 0x374   :  { %v2331_v36 = vpop.permute.xlu2 %2330  ;;  %v2284_v44 = vadd.f32 %v2261_v1, %v4645_v58 }
 0x37a   :  { %v2323_v45 = vpop.permute.xlu1 %2322 }
 0x37b   :  { %v2343_v40 = vsel %vm12_vm1, %v2323_v45, %v2325_v25 }
 0x37c   :  { %v2362_v24 = vadd.f32 %v2343_v40, %v2276_v30  ;;  %v2321_v60 = vpop.permute.xlu0 %2320 }
 0x37d   :  { %v2342_v10 = vsel %vm12_vm1, %v2319_v51, %v2321_v60  ;;  %v2361_v3 = vadd.f32 %v2321_v60, %v2275_v35 }
 0x37e   :  { %2375 = vst [vmem:[%s4714_s2 + $0x10] sm:$0xff] %v2362_v24  ;;  %v2360_v7 = vadd.f32 %v2342_v10, %v2274_v61 }
 0x37f   :  { %2374 = vst.msk [vmem:[%s4714_s2 + $0x8] sm:$0xff] %vm2373_vm15, %v2361_v3 }
 0x380   :  { %2372 = vst [vmem:[%s4714_s2] sm:$0xff] %v2360_v7 }
 0x384   :  { %v2337_v56 = vpop.permute.xlu2 %2336  ;;  %v2327_v0 = vpop.permute.xlu0 %2326 }
 0x385   :  { %v2369_v49 = vadd.f32 %v2337_v56, %v2283_v55 }
 0x387   :  { %2382 = vst.msk [vmem:[%s4714_s2 + $0x48] sm:$0xff] %vm2373_vm15, %v2369_v49 }
 0x38c   :  { %v2329_v22 = vpop.permute.xlu1 %2328 }
 0x38d   :  { %v2344_v9 = vsel %vm12_vm1, %v2327_v0, %v2329_v22  ;;  %v2365_v46 = vadd.f32 %v2329_v22, %v2279_v43 }
 0x38e   :  { %v2364_v39 = vadd.f32 %v2344_v9, %v2278_v28 }
 0x38f   :  { %2378 = vst.msk [vmem:[%s4714_s2 + $0x28] sm:$0xff] %vm2373_vm15, %v2365_v46 }
 0x390   :  { %2377 = vst [vmem:[%s4714_s2 + $0x20] sm:$0xff] %v2364_v39 }
 0x394   :  { %v2335_v13 = vpop.permute.xlu1 %2334  ;;  %v2333_v53 = vpop.permute.xlu0 %2332 }
 0x395   :  { %v2346_v42 = vsel %vm12_vm1, %v2335_v13, %v2337_v56  ;;  %v2345_v34 = vsel %vm12_vm1, %v2331_v36, %v2333_v53  ;;  %v2367_v29 = vadd.f32 %v2333_v53, %v2281_v32 }
 0x396   :  { %v2368_v48 = vadd.f32 %v2346_v42, %v2282_v11  ;;  %v2366_v57 = vadd.f32 %v2345_v34, %v2280_v6 }
 0x397   :  { %2380 = vst.msk [vmem:[%s4714_s2 + $0x38] sm:$0xff] %vm2373_vm15, %v2367_v29 }
 0x398   :  { %2381 = vst [vmem:[%s4714_s2 + $0x40] sm:$0xff] %v2368_v48 }
 0x399   :  { %2379 = vst [vmem:[%s4714_s2 + $0x30] sm:$0xff] %v2366_v57 }
 0x39c   :  { %v2341_v2 = vpop.permute.xlu1 %2340 }
 0x39d   :  { %v2371_v15 = vadd.f32 %v2341_v2, %v2285_v62  ;;  %v2339_v31 = vpop.permute.xlu0 %2338 }
 0x39e   :  { %v2347_v8 = vsel %vm12_vm1, %v2339_v31, %v2341_v2 }
 0x39f   :  { %2384 = vst.msk [vmem:[%s4714_s2 + $0x58] sm:$0xff] %vm2373_vm15, %v2371_v15  ;;  %v2370_v20 = vadd.f32 %v2347_v8, %v2284_v44 }
 0x3a1   :  { %2383 = vst [vmem:[%s4714_s2 + $0x50] sm:$0xff] %v2370_v20 }

</bundles_post_ra>
